<compile_context>
chip_gen: v7x
topology: tpu7x:2x2x1
jax: 0.10.0
libtpu: 0.0.40
codegen_flags: <defaults>
</compile_context>

<pallas_src>
import functools

import jax
import jax.numpy as jnp
from jax import lax
from jax.experimental import pallas as pl
from jax.experimental.pallas import tpu as pltpu


def _round_up(v, m):
    return ((v + m - 1) // m) * m


def _pick_time_block(T, tb_cap):
    """Largest divisor of T <= tb_cap (if reasonably close), else tb_cap."""
    tb_cap = max(1, min(int(tb_cap), T))
    best_div = 1
    for d in range(1, tb_cap + 1):
        if T % d == 0:
            best_div = d
    return best_div if 2 * best_div >= tb_cap else tb_cap


def _rnn_kernel(x_ref, h0_ref, wx_ref, wh_ref, b_ref, h_out_ref,
                prev_h_ref, xwb_ref, *opt_scratch, tb, nb, d, unroll):
    """One grid step = one chunk of `tb` timesteps.

    x_ref:      (tb*nb, d)   time-major input rows for this chunk (true D)
    h0_ref:     (nb, Hp)     initial hidden state (resident, f32)
    wx_ref:     (Dp, Hp)     input->hidden weights (resident)
    wh_ref:     (Hp, Hp)     hidden->hidden weights (resident)
    b_ref:      (1, Hp)      bias (resident, f32)
    h_out_ref:  (tb*nb, Hp)  hidden states for this chunk
    prev_h_ref: (nb, Hp)     f32 carried hidden state (VMEM scratch)
    xwb_ref:    (tb*nb, Hp)  f32 chunk projection scratch (bounds live range)
    opt_scratch: optional (tb*nb, Dp) lane-padded x scratch when d % 128 != 0
    """
    xpad_ref = opt_scratch[0] if opt_scratch else None

    @pl.when(pl.program_id(0) == 0)
    def _():
        prev_h_ref[...] = h0_ref[...]
        if xpad_ref is not None:
            # Zero once; lanes >= d are never overwritten afterwards.
            xpad_ref[...] = jnp.zeros_like(xpad_ref)

    # Chunk-level input projection: one big MXU matmul per chunk, written
    # straight into VMEM scratch instead of being kept live in vregs.  Bias
    # broadcast happens once per chunk.
    if xpad_ref is not None:
        xpad_ref[:, 0:d] = x_ref[...]           # lane-pad in VMEM (masked store)
        x_blk = xpad_ref[...]
    else:
        x_blk = x_ref[...]
    xwb_ref[...] = (
        jnp.dot(x_blk, wx_ref[...], preferred_element_type=jnp.float32)
        + b_ref[...]
    )

    # Serial recurrence: only one (nb, Hp) slice of the projection is live at
    # a time; Wh is read from VMEM each step (no long-lived full-Wh value).
    def step(i, prev_h):
        row = pl.multiple_of(i * nb, nb)
        a = xwb_ref[pl.ds(row, nb), :] + jnp.dot(
            prev_h.astype(wh_ref.dtype), wh_ref[...],
            preferred_element_type=jnp.float32)
        nh = jnp.tanh(a)                         # f32 elementwise (v5e-safe)
        h_out_ref[pl.ds(row, nb), :] = nh.astype(h_out_ref.dtype)
        return nh

    prev_h_ref[...] = lax.fori_loop(0, tb, step, prev_h_ref[...],
                                    unroll=unroll)


def rnn_forward_pallas(x, h0, Wx, Wh, b, *, time_block=None,
                       compute_dtype=None, out_dtype=None):
    """x: (N, T, D), h0: (N, H), Wx: (D, H), Wh: (H, H), b: (H,) -> (N, T, H).

    compute_dtype: optional dtype (e.g. jnp.bfloat16) for the MXU matmul
      inputs; accumulation, hidden-state carry, bias and tanh stay f32.
      (bf16 halves HBM stream bytes and uses the MXU native path; default
      keeps the module's dtype for exact semantic fidelity.)
    out_dtype: dtype of the returned hidden states (default: h0.dtype).
    """
    N, T, D = x.shape
    H = h0.shape[1]
    out_dtype = jnp.dtype(h0.dtype if out_dtype is None else out_dtype)
    mm_dtype = jnp.dtype(compute_dtype if compute_dtype is not None else x.dtype)
    in_item = mm_dtype.itemsize
    out_item = out_dtype.itemsize

    # Layout: streamed x keeps its true D in the lane dim; hidden dim padded
    # to 128 lanes (dense stores); batch padded to the sublane quantum.
    sub = 16 if in_item == 2 else 8
    Np = _round_up(max(N, sub), sub)
    Hp = _round_up(max(H, 128), 128)
    pad_d = (D % 128) != 0
    Dp = _round_up(D, 128) if pad_d else D

    # ---- generation-aware VMEM budget -------------------------------------
    try:
        phys_vmem = int(pltpu.get_tpu_info().vmem_capacity_bytes)
    except Exception:
        phys_vmem = 64 * 1024 * 1024             # conservative (v7x-sized)
    if phys_vmem <= 64 * 1024 * 1024:            # v7x: leave headroom
        vmem_cap = min(56 * 1024 * 1024, phys_vmem - 8 * 1024 * 1024)
    else:                                        # v5e/v6e: 128 MiB parts
        vmem_cap = min(100 * 1024 * 1024, phys_vmem - 28 * 1024 * 1024)
    vmem_cap = max(vmem_cap, 16 * 1024 * 1024)

    # Per-row / fixed VMEM accounting.  Residents counted at 2 buffers so the
    # estimate also covers the double-buffered fallback path.
    per_row = (2 * D * in_item                   # x stream (double-buffered)
               + 2 * Hp * out_item               # out stream (double-buffered)
               + Hp * 4                          # xwb projection scratch
               + (Dp * in_item if pad_d else 0)) # lane-padded x scratch
    fixed = (2 * ((Dp * Hp + Hp * Hp) * in_item + (Np * Hp + Hp) * 4)
             + Np * Hp * 4)                      # hidden-state carry

    # ---- time-block selection ----------------------------------------------
    if time_block is None:
        budget = vmem_cap - 2 * 1024 * 1024
        tb_vmem = max(1, (budget - fixed) // max(1, per_row * Np))
        tb_target = max(1, -(-512 // Np))        # target rows ~512+
        tb = _pick_time_block(T, min(tb_target, tb_vmem))
    else:
        tb = max(1, min(int(time_block), T))
    Tp = _round_up(T, tb)
    rows = tb * Np
    vmem_limit = int(min(vmem_cap,
                         max(32 * 1024 * 1024,
                             fixed + per_row * rows + 4 * 1024 * 1024)))

    # ---- operand preparation (time-major; no HBM padding of D) --------------
    xt = jnp.transpose(x, (1, 0, 2))             # (T, N, D)
    if (Tp, Np) != (T, N):
        xt = jnp.pad(xt, ((0, Tp - T), (0, Np - N), (0, 0)))
    x2d = xt.reshape(Tp * Np, D).astype(mm_dtype)

    h0p = jnp.pad(h0, ((0, Np - N), (0, Hp - H))).astype(jnp.float32)
    Wxp = jnp.pad(Wx, ((0, Dp - D), (0, Hp - H))).astype(mm_dtype)
    Whp = jnp.pad(Wh, ((0, Hp - H), (0, Hp - H))).astype(mm_dtype)
    bp = jnp.pad(b, (0, Hp - H)).astype(jnp.float32).reshape(1, Hp)

    unroll = True if tb <= 32 else 8
    kernel = functools.partial(_rnn_kernel, tb=tb, nb=Np, d=D, unroll=unroll)

    scratch_shapes = [
        pltpu.VMEM((Np, Hp), jnp.float32),       # carried hidden state
        pltpu.VMEM((rows, Hp), jnp.float32),     # chunk projection
    ]
    if pad_d:
        scratch_shapes.append(pltpu.VMEM((rows, Dp), mm_dtype))

    compiler_params = pltpu.CompilerParams(
        dimension_semantics=("arbitrary",),      # sequential recurrence
        vmem_limit_bytes=vmem_limit,
    )

    def build(single_buffer_residents):
        def resident(shape):
            if single_buffer_residents:
                return pl.BlockSpec(shape, lambda t: (0, 0),
                                    pipeline_mode=pl.Buffered(1))
            return pl.BlockSpec(shape, lambda t: (0, 0))

        return pl.pallas_call(
            kernel,
            out_shape=jax.ShapeDtypeStruct((Tp * Np, Hp), out_dtype),
            grid_spec=pltpu.PrefetchScalarGridSpec(
                num_scalar_prefetch=0,
                grid=(Tp // tb,),
                in_specs=[
                    pl.BlockSpec((rows, D), lambda t: (t, 0)),  # x (true D)
                    resident((Np, Hp)),                         # h0
                    resident((Dp, Hp)),                         # Wx
                    resident((Hp, Hp)),                         # Wh
                    resident((1, Hp)),                          # b
                ],
                out_specs=pl.BlockSpec((rows, Hp), lambda t: (t, 0)),
                scratch_shapes=scratch_shapes,
            ),
            compiler_params=compiler_params,
        )

    try:
        h2d = build(True)(x2d, h0p, Wxp, Whp, bp)
    except Exception:
        # pipeline_mode=pl.Buffered(1) not supported on this jax/libtpu:
        # fall back to default (double-buffered) resident-operand specs.
        h2d = build(False)(x2d, h0p, Wxp, Whp, bp)

    h = h2d.reshape(Tp, Np, Hp)[:T, :N, :H]
    return jnp.transpose(h, (1, 0, 2))


def rnn_forward_ref(x, h0, Wx, Wh, b, compute_dtype=None):
    """Pure-JAX reference matching the PyTorch rnn_forward semantics."""
    cd = compute_dtype if compute_dtype is not None else x.dtype
    xq = x.astype(cd)
    Wxq = Wx.astype(cd)
    Whq = Wh.astype(cd)
    b32 = b.astype(jnp.float32)

    def step(prev_h, x_t):
        a = (
            jnp.dot(x_t, Wxq, preferred_element_type=jnp.float32)
            + jnp.dot(prev_h.astype(cd), Whq, preferred_element_type=jnp.float32)
            + b32
        )
        next_h = jnp.tanh(a)
        return next_h, next_h

    _, h = jax.lax.scan(step, h0.astype(jnp.float32), jnp.swapaxes(xq, 0, 1))
    return jnp.swapaxes(h, 0, 1).astype(h0.dtype)


if __name__ == "__main__":
    # Small shapes consistent with the module: N=2 sequences, T=8 steps,
    # D=16 input dim, H=32 hidden dim.
    N, T, D, H = 2, 8, 16, 32
    key = jax.random.PRNGKey(0)
    kx, kh0, kwx, kwh = jax.random.split(key, 4)

    x = jax.random.normal(kx, (N, T, D), dtype=jnp.float32)
    h0 = jax.random.normal(kh0, (N, H), dtype=jnp.float32)

    # Deterministic parameter init mirroring the PyTorch __init__:
    # Wx ~ N(0,1)/sqrt(D), Wh ~ N(0,1)/sqrt(H), b = 0.
    Wx = jax.random.normal(kwx, (D, H), dtype=jnp.float32) / jnp.sqrt(D * 1.0)
    Wh = jax.random.normal(kwh, (H, H), dtype=jnp.float32) / jnp.sqrt(H * 1.0)
    b = jnp.zeros((H,), dtype=jnp.float32)

    h_ref = rnn_forward_ref(x, h0, Wx, Wh, b)

    # f32, explicit small chunk (2 sequential chunks -> exercises the
    # cross-chunk hidden-state carry).
    h_pallas = jax.block_until_ready(
        rnn_forward_pallas(x, h0, Wx, Wh, b, time_block=4))
    assert h_pallas.shape == (N, T, H)
    assert jnp.allclose(h_pallas, h_ref, atol=1e-4, rtol=1e-4), "f32 chunked mismatch"

    # f32, auto chunk sizing (single chunk here).
    h_auto = jax.block_until_ready(rnn_forward_pallas(x, h0, Wx, Wh, b))
    assert jnp.allclose(h_auto, h_ref, atol=1e-4, rtol=1e-4), "f32 auto mismatch"

    # bf16 matmul inputs / f32 accumulation (MXU-native on v5e/v6e/v7x).
    h_bf16 = jax.block_until_ready(
        rnn_forward_pallas(x, h0, Wx, Wh, b, compute_dtype=jnp.bfloat16))
    h_ref_bf16 = rnn_forward_ref(x, h0, Wx, Wh, b, compute_dtype=jnp.bfloat16)
    assert jnp.allclose(h_bf16, h_ref_bf16, atol=2e-2, rtol=2e-2), "bf16 mismatch"

    print("KERNEL_OK")
</pallas_src>

<mosaic_0001>
module attributes {stable_mosaic.version = 11 : i64} {
  func.func @_rnn_kernel(%arg0: i32, %arg1: memref<32x16xf32, #tpu.memory_space<vmem>>, %arg2: memref<8x128xf32, #tpu.memory_space<vmem>>, %arg3: memref<128x128xf32, #tpu.memory_space<vmem>>, %arg4: memref<128x128xf32, #tpu.memory_space<vmem>>, %arg5: memref<1x128xf32, #tpu.memory_space<vmem>>, %arg6: memref<32x128xf32, #tpu.memory_space<vmem>>, %arg7: memref<8x128xf32, #tpu.memory_space<vmem>>, %arg8: memref<32x128xf32, #tpu.memory_space<vmem>>, %arg9: memref<32x128xf32, #tpu.memory_space<vmem>>) attributes {dimension_semantics = [#tpu.dimension_semantics<arbitrary>], iteration_bounds = array<i64: 2>, scalar_prefetch = 0 : i64, scratch_operands = 3 : i64, tpu.core_type = #tpu.core_type<tc>, window_params = [{transform_indices = @transform_0, window_bounds = array<i64: 32, 16>}, {pipeline_mode = #tpu.pipeline_mode<synchronous>, transform_indices = @transform_1, window_bounds = array<i64: 8, 128>}, {pipeline_mode = #tpu.pipeline_mode<synchronous>, transform_indices = @transform_2, window_bounds = array<i64: 128, 128>}, {pipeline_mode = #tpu.pipeline_mode<synchronous>, transform_indices = @transform_3, window_bounds = array<i64: 128, 128>}, {pipeline_mode = #tpu.pipeline_mode<synchronous>, transform_indices = @transform_4, window_bounds = array<i64: 1, 128>}, {transform_indices = @transform_5, window_bounds = array<i64: 32, 128>}]} {
    %c0_i32 = arith.constant 0 : i32
    %0 = arith.cmpi eq, %arg0, %c0_i32 : i32
    %1 = arith.extui %0 : i1 to i32
    %c0_i32_0 = arith.constant 0 : i32
    %2 = arith.cmpi ne, %1, %c0_i32_0 : i32
    scf.if %2 {
      %c0_40 = arith.constant 0 : index
      %c0_41 = arith.constant 0 : index
      %54 = vector.load %arg2[%c0_40, %c0_41] : memref<8x128xf32, #tpu.memory_space<vmem>>, vector<8x128xf32>
      %c0_42 = arith.constant 0 : index
      %c0_43 = arith.constant 0 : index
      %55 = vector.load %arg7[%c0_42, %c0_43] : memref<8x128xf32, #tpu.memory_space<vmem>>, vector<8x128xf32>
      tpu.vector_store %arg7[%c0_42, %c0_43], %54 {strides = array<i32>} : memref<8x128xf32, #tpu.memory_space<vmem>>, vector<8x128xf32>,
      %cst_44 = arith.constant 0.000000e+00 : f32
      %56 = vector.broadcast %cst_44 : f32 to vector<32x128xf32>
      %c0_45 = arith.constant 0 : index
      %c0_46 = arith.constant 0 : index
      %57 = vector.load %arg9[%c0_45, %c0_46] : memref<32x128xf32, #tpu.memory_space<vmem>>, vector<32x128xf32>
      tpu.vector_store %arg9[%c0_45, %c0_46], %56 {strides = array<i32>} : memref<32x128xf32, #tpu.memory_space<vmem>>, vector<32x128xf32>,
    } else {
    }
    %c0 = arith.constant 0 : index
    %c0_1 = arith.constant 0 : index
    %3 = vector.load %arg1[%c0, %c0_1] : memref<32x16xf32, #tpu.memory_space<vmem>>, vector<32x16xf32>
    %c0_2 = arith.constant 0 : index
    %c0_3 = arith.constant 0 : index
    %4 = vector.load %arg9[%c0_2, %c0_3] : memref<32x128xf32, #tpu.memory_space<vmem>>, vector<32x16xf32>
    tpu.vector_store %arg9[%c0_2, %c0_3], %3 {strides = array<i32>} : memref<32x128xf32, #tpu.memory_space<vmem>>, vector<32x16xf32>,
    %c0_4 = arith.constant 0 : index
    %c0_5 = arith.constant 0 : index
    %5 = vector.load %arg9[%c0_4, %c0_5] : memref<32x128xf32, #tpu.memory_space<vmem>>, vector<32x128xf32>
    %c0_6 = arith.constant 0 : index
    %c0_7 = arith.constant 0 : index
    %6 = vector.load %arg3[%c0_6, %c0_7] : memref<128x128xf32, #tpu.memory_space<vmem>>, vector<128x128xf32>
    %cst = arith.constant dense<0.000000e+00> : vector<32x128xf32>
    %7 = tpu.matmul %5, %6, %cst {dimension_numbers = #tpu.dot_dimension_numbers<[1], [0], [0], [1], [0, 0, 1, 1], [], []>} : vector<32x128xf32>, vector<128x128xf32>, vector<32x128xf32> -> vector<32x128xf32>
    %c0_8 = arith.constant 0 : index
    %c0_9 = arith.constant 0 : index
    %8 = vector.load %arg5[%c0_8, %c0_9] : memref<1x128xf32, #tpu.memory_space<vmem>>, vector<1x128xf32>
    %9 = vector.broadcast %8 : vector<1x128xf32> to vector<32x128xf32>
    %10 = arith.addf %7, %9 : vector<32x128xf32>
    %c0_10 = arith.constant 0 : index
    %c0_11 = arith.constant 0 : index
    %11 = vector.load %arg8[%c0_10, %c0_11] : memref<32x128xf32, #tpu.memory_space<vmem>>, vector<32x128xf32>
    tpu.vector_store %arg8[%c0_10, %c0_11], %10 {strides = array<i32>} : memref<32x128xf32, #tpu.memory_space<vmem>>, vector<32x128xf32>,
    %c0_12 = arith.constant 0 : index
    %c0_13 = arith.constant 0 : index
    %12 = vector.load %arg7[%c0_12, %c0_13] : memref<8x128xf32, #tpu.memory_space<vmem>>, vector<8x128xf32>
    %c0_i32_14 = arith.constant 0 : i32
    %c8_i32 = arith.constant 8 : i32
    %13 = arith.muli %c0_i32_14, %c8_i32 : i32
    %14 = tpu.assume_multiple %13, 8 : i32
    %15 = arith.index_cast %14 : i32 to index
    %c0_15 = arith.constant 0 : index
    %16 = vector.load %arg8[%15, %c0_15] : memref<32x128xf32, #tpu.memory_space<vmem>>, vector<8x128xf32>
    %c0_16 = arith.constant 0 : index
    %c0_17 = arith.constant 0 : index
    %17 = vector.load %arg4[%c0_16, %c0_17] : memref<128x128xf32, #tpu.memory_space<vmem>>, vector<128x128xf32>
    %cst_18 = arith.constant dense<0.000000e+00> : vector<8x128xf32>
    %18 = tpu.matmul %12, %17, %cst_18 {dimension_numbers = #tpu.dot_dimension_numbers<[1], [0], [0], [1], [0, 0, 1, 1], [], []>} : vector<8x128xf32>, vector<128x128xf32>, vector<8x128xf32> -> vector<8x128xf32>
    %19 = arith.addf %16, %18 : vector<8x128xf32>
    %20 = math.tanh %19 : vector<8x128xf32>
    %21 = arith.index_cast %14 : i32 to index
    %c0_19 = arith.constant 0 : index
    %22 = vector.load %arg6[%21, %c0_19] : memref<32x128xf32, #tpu.memory_space<vmem>>, vector<8x128xf32>
    tpu.vector_store %arg6[%21, %c0_19], %20 {strides = array<i32>} : memref<32x128xf32, #tpu.memory_space<vmem>>, vector<8x128xf32>,
    %c1_i32 = arith.constant 1 : i32
    %c8_i32_20 = arith.constant 8 : i32
    %23 = arith.muli %c1_i32, %c8_i32_20 : i32
    %24 = tpu.assume_multiple %23, 8 : i32
    %25 = arith.index_cast %24 : i32 to index
    %c0_21 = arith.constant 0 : index
    %26 = vector.load %arg8[%25, %c0_21] : memref<32x128xf32, #tpu.memory_space<vmem>>, vector<8x128xf32>
    %c0_22 = arith.constant 0 : index
    %c0_23 = arith.constant 0 : index
    %27 = vector.load %arg4[%c0_22, %c0_23] : memref<128x128xf32, #tpu.memory_space<vmem>>, vector<128x128xf32>
    %cst_24 = arith.constant dense<0.000000e+00> : vector<8x128xf32>
    %28 = tpu.matmul %20, %27, %cst_24 {dimension_numbers = #tpu.dot_dimension_numbers<[1], [0], [0], [1], [0, 0, 1, 1], [], []>} : vector<8x128xf32>, vector<128x128xf32>, vector<8x128xf32> -> vector<8x128xf32>
    %29 = arith.addf %26, %28 : vector<8x128xf32>
    %30 = math.tanh %29 : vector<8x128xf32>
    %31 = arith.index_cast %24 : i32 to index
    %c0_25 = arith.constant 0 : index
    %32 = vector.load %arg6[%31, %c0_25] : memref<32x128xf32, #tpu.memory_space<vmem>>, vector<8x128xf32>
    tpu.vector_store %arg6[%31, %c0_25], %30 {strides = array<i32>} : memref<32x128xf32, #tpu.memory_space<vmem>>, vector<8x128xf32>,
    %c2_i32 = arith.constant 2 : i32
    %c8_i32_26 = arith.constant 8 : i32
    %33 = arith.muli %c2_i32, %c8_i32_26 : i32
    %34 = tpu.assume_multiple %33, 8 : i32
    %35 = arith.index_cast %34 : i32 to index
    %c0_27 = arith.constant 0 : index
    %36 = vector.load %arg8[%35, %c0_27] : memref<32x128xf32, #tpu.memory_space<vmem>>, vector<8x128xf32>
    %c0_28 = arith.constant 0 : index
    %c0_29 = arith.constant 0 : index
    %37 = vector.load %arg4[%c0_28, %c0_29] : memref<128x128xf32, #tpu.memory_space<vmem>>, vector<128x128xf32>
    %cst_30 = arith.constant dense<0.000000e+00> : vector<8x128xf32>
    %38 = tpu.matmul %30, %37, %cst_30 {dimension_numbers = #tpu.dot_dimension_numbers<[1], [0], [0], [1], [0, 0, 1, 1], [], []>} : vector<8x128xf32>, vector<128x128xf32>, vector<8x128xf32> -> vector<8x128xf32>
    %39 = arith.addf %36, %38 : vector<8x128xf32>
    %40 = math.tanh %39 : vector<8x128xf32>
    %41 = arith.index_cast %34 : i32 to index
    %c0_31 = arith.constant 0 : index
    %42 = vector.load %arg6[%41, %c0_31] : memref<32x128xf32, #tpu.memory_space<vmem>>, vector<8x128xf32>
    tpu.vector_store %arg6[%41, %c0_31], %40 {strides = array<i32>} : memref<32x128xf32, #tpu.memory_space<vmem>>, vector<8x128xf32>,
    %c3_i32 = arith.constant 3 : i32
    %c8_i32_32 = arith.constant 8 : i32
    %43 = arith.muli %c3_i32, %c8_i32_32 : i32
    %44 = tpu.assume_multiple %43, 8 : i32
    %45 = arith.index_cast %44 : i32 to index
    %c0_33 = arith.constant 0 : index
    %46 = vector.load %arg8[%45, %c0_33] : memref<32x128xf32, #tpu.memory_space<vmem>>, vector<8x128xf32>
    %c0_34 = arith.constant 0 : index
    %c0_35 = arith.constant 0 : index
    %47 = vector.load %arg4[%c0_34, %c0_35] : memref<128x128xf32, #tpu.memory_space<vmem>>, vector<128x128xf32>
    %cst_36 = arith.constant dense<0.000000e+00> : vector<8x128xf32>
    %48 = tpu.matmul %40, %47, %cst_36 {dimension_numbers = #tpu.dot_dimension_numbers<[1], [0], [0], [1], [0, 0, 1, 1], [], []>} : vector<8x128xf32>, vector<128x128xf32>, vector<8x128xf32> -> vector<8x128xf32>
    %49 = arith.addf %46, %48 : vector<8x128xf32>
    %50 = math.tanh %49 : vector<8x128xf32>
    %51 = arith.index_cast %44 : i32 to index
    %c0_37 = arith.constant 0 : index
    %52 = vector.load %arg6[%51, %c0_37] : memref<32x128xf32, #tpu.memory_space<vmem>>, vector<8x128xf32>
    tpu.vector_store %arg6[%51, %c0_37], %50 {strides = array<i32>} : memref<32x128xf32, #tpu.memory_space<vmem>>, vector<8x128xf32>,
    %c4_i32 = arith.constant 4 : i32
    %c0_38 = arith.constant 0 : index
    %c0_39 = arith.constant 0 : index
    %53 = vector.load %arg7[%c0_38, %c0_39] : memref<8x128xf32, #tpu.memory_space<vmem>>, vector<8x128xf32>
    tpu.vector_store %arg7[%c0_38, %c0_39], %50 {strides = array<i32>} : memref<8x128xf32, #tpu.memory_space<vmem>>, vector<8x128xf32>,
    return
  }
  func.func @transform_0(%arg0: i32) -> (i32, i32) {
    %c0_i32 = arith.constant 0 : i32
    %c0_i32_0 = arith.constant 0 : i32
    return %arg0, %c0_i32 : i32, i32
  }
  func.func @transform_1(%arg0: i32) -> (i32, i32) {
    %c0_i32 = arith.constant 0 : i32
    %c0_i32_0 = arith.constant 0 : i32
    %c0_i32_1 = arith.constant 0 : i32
    return %c0_i32, %c0_i32_0 : i32, i32
  }
  func.func @transform_2(%arg0: i32) -> (i32, i32) {
    %c0_i32 = arith.constant 0 : i32
    %c0_i32_0 = arith.constant 0 : i32
    %c0_i32_1 = arith.constant 0 : i32
    return %c0_i32, %c0_i32_0 : i32, i32
  }
  func.func @transform_3(%arg0: i32) -> (i32, i32) {
    %c0_i32 = arith.constant 0 : i32
    %c0_i32_0 = arith.constant 0 : i32
    %c0_i32_1 = arith.constant 0 : i32
    return %c0_i32, %c0_i32_0 : i32, i32
  }
  func.func @transform_4(%arg0: i32) -> (i32, i32) {
    %c0_i32 = arith.constant 0 : i32
    %c0_i32_0 = arith.constant 0 : i32
    %c0_i32_1 = arith.constant 0 : i32
    return %c0_i32, %c0_i32_0 : i32, i32
  }
  func.func @transform_5(%arg0: i32) -> (i32, i32) {
    %c0_i32 = arith.constant 0 : i32
    %c0_i32_0 = arith.constant 0 : i32
    return %arg0, %c0_i32 : i32, i32
  }
}

module attributes {stable_mosaic.version = 11 : i64} {
  func.func @_rnn_kernel(%arg0: i32, %arg1: memref<32x16xf32, #tpu.memory_space<vmem>>, %arg2: memref<8x128xf32, #tpu.memory_space<vmem>>, %arg3: memref<128x128xf32, #tpu.memory_space<vmem>>, %arg4: memref<128x128xf32, #tpu.memory_space<vmem>>, %arg5: memref<1x128xf32, #tpu.memory_space<vmem>>, %arg6: memref<32x128xf32, #tpu.memory_space<vmem>>, %arg7: memref<8x128xf32, #tpu.memory_space<vmem>>, %arg8: memref<32x128xf32, #tpu.memory_space<vmem>>, %arg9: memref<32x128xf32, #tpu.memory_space<vmem>>) attributes {dimension_semantics = [#tpu.dimension_semantics<arbitrary>], iteration_bounds = array<i64: 2>, scalar_prefetch = 0 : i64, scratch_operands = 3 : i64, tpu.core_type = #tpu.core_type<tc>, window_params = [{transform_indices = @transform_0, window_bounds = array<i64: 32, 16>}, {pipeline_mode = #tpu.pipeline_mode<synchronous>, transform_indices = @transform_1, window_bounds = array<i64: 8, 128>}, {pipeline_mode = #tpu.pipeline_mode<synchronous>, transform_indices = @transform_2, window_bounds = array<i64: 128, 128>}, {pipeline_mode = #tpu.pipeline_mode<synchronous>, transform_indices = @transform_3, window_bounds = array<i64: 128, 128>}, {pipeline_mode = #tpu.pipeline_mode<synchronous>, transform_indices = @transform_4, window_bounds = array<i64: 1, 128>}, {transform_indices = @transform_5, window_bounds = array<i64: 32, 128>}]} {
    %c0_i32 = arith.constant 0 : i32
    %0 = arith.cmpi eq, %arg0, %c0_i32 : i32
    %1 = arith.extui %0 : i1 to i32
    %c0_i32_0 = arith.constant 0 : i32
    %2 = arith.cmpi ne, %1, %c0_i32_0 : i32
    scf.if %2 {
      %c0_40 = arith.constant 0 : index
      %c0_41 = arith.constant 0 : index
      %54 = vector.load %arg2[%c0_40, %c0_41] : memref<8x128xf32, #tpu.memory_space<vmem>>, vector<8x128xf32>
      %c0_42 = arith.constant 0 : index
      %c0_43 = arith.constant 0 : index
      %55 = vector.load %arg7[%c0_42, %c0_43] : memref<8x128xf32, #tpu.memory_space<vmem>>, vector<8x128xf32>
      tpu.vector_store %arg7[%c0_42, %c0_43], %54 {strides = array<i32>} : memref<8x128xf32, #tpu.memory_space<vmem>>, vector<8x128xf32>,
      %cst_44 = arith.constant 0.000000e+00 : f32
      %56 = vector.broadcast %cst_44 : f32 to vector<32x128xf32>
      %c0_45 = arith.constant 0 : index
      %c0_46 = arith.constant 0 : index
      %57 = vector.load %arg9[%c0_45, %c0_46] : memref<32x128xf32, #tpu.memory_space<vmem>>, vector<32x128xf32>
      tpu.vector_store %arg9[%c0_45, %c0_46], %56 {strides = array<i32>} : memref<32x128xf32, #tpu.memory_space<vmem>>, vector<32x128xf32>,
    } else {
    }
    %c0 = arith.constant 0 : index
    %c0_1 = arith.constant 0 : index
    %3 = vector.load %arg1[%c0, %c0_1] : memref<32x16xf32, #tpu.memory_space<vmem>>, vector<32x16xf32>
    %c0_2 = arith.constant 0 : index
    %c0_3 = arith.constant 0 : index
    %4 = vector.load %arg9[%c0_2, %c0_3] : memref<32x128xf32, #tpu.memory_space<vmem>>, vector<32x16xf32>
    tpu.vector_store %arg9[%c0_2, %c0_3], %3 {strides = array<i32>} : memref<32x128xf32, #tpu.memory_space<vmem>>, vector<32x16xf32>,
    %c0_4 = arith.constant 0 : index
    %c0_5 = arith.constant 0 : index
    %5 = vector.load %arg9[%c0_4, %c0_5] : memref<32x128xf32, #tpu.memory_space<vmem>>, vector<32x128xf32>
    %c0_6 = arith.constant 0 : index
    %c0_7 = arith.constant 0 : index
    %6 = vector.load %arg3[%c0_6, %c0_7] : memref<128x128xf32, #tpu.memory_space<vmem>>, vector<128x128xf32>
    %cst = arith.constant dense<0.000000e+00> : vector<32x128xf32>
    %7 = tpu.matmul %5, %6, %cst {dimension_numbers = #tpu.dot_dimension_numbers<[1], [0], [0], [1], [0, 0, 1, 1], [], []>} : vector<32x128xf32>, vector<128x128xf32>, vector<32x128xf32> -> vector<32x128xf32>
    %c0_8 = arith.constant 0 : index
    %c0_9 = arith.constant 0 : index
    %8 = vector.load %arg5[%c0_8, %c0_9] : memref<1x128xf32, #tpu.memory_space<vmem>>, vector<1x128xf32>
    %9 = vector.broadcast %8 : vector<1x128xf32> to vector<32x128xf32>
    %10 = arith.addf %7, %9 : vector<32x128xf32>
    %c0_10 = arith.constant 0 : index
    %c0_11 = arith.constant 0 : index
    %11 = vector.load %arg8[%c0_10, %c0_11] : memref<32x128xf32, #tpu.memory_space<vmem>>, vector<32x128xf32>
    tpu.vector_store %arg8[%c0_10, %c0_11], %10 {strides = array<i32>} : memref<32x128xf32, #tpu.memory_space<vmem>>, vector<32x128xf32>,
    %c0_12 = arith.constant 0 : index
    %c0_13 = arith.constant 0 : index
    %12 = vector.load %arg7[%c0_12, %c0_13] : memref<8x128xf32, #tpu.memory_space<vmem>>, vector<8x128xf32>
    %c0_i32_14 = arith.constant 0 : i32
    %c8_i32 = arith.constant 8 : i32
    %13 = arith.muli %c0_i32_14, %c8_i32 : i32
    %14 = tpu.assume_multiple %13, 8 : i32
    %15 = arith.index_cast %14 : i32 to index
    %c0_15 = arith.constant 0 : index
    %16 = vector.load %arg8[%15, %c0_15] : memref<32x128xf32, #tpu.memory_space<vmem>>, vector<8x128xf32>
    %c0_16 = arith.constant 0 : index
    %c0_17 = arith.constant 0 : index
    %17 = vector.load %arg4[%c0_16, %c0_17] : memref<128x128xf32, #tpu.memory_space<vmem>>, vector<128x128xf32>
    %cst_18 = arith.constant dense<0.000000e+00> : vector<8x128xf32>
    %18 = tpu.matmul %12, %17, %cst_18 {dimension_numbers = #tpu.dot_dimension_numbers<[1], [0], [0], [1], [0, 0, 1, 1], [], []>} : vector<8x128xf32>, vector<128x128xf32>, vector<8x128xf32> -> vector<8x128xf32>
    %19 = arith.addf %16, %18 : vector<8x128xf32>
    %20 = math.tanh %19 : vector<8x128xf32>
    %21 = arith.index_cast %14 : i32 to index
    %c0_19 = arith.constant 0 : index
    %22 = vector.load %arg6[%21, %c0_19] : memref<32x128xf32, #tpu.memory_space<vmem>>, vector<8x128xf32>
    tpu.vector_store %arg6[%21, %c0_19], %20 {strides = array<i32>} : memref<32x128xf32, #tpu.memory_space<vmem>>, vector<8x128xf32>,
    %c1_i32 = arith.constant 1 : i32
    %c8_i32_20 = arith.constant 8 : i32
    %23 = arith.muli %c1_i32, %c8_i32_20 : i32
    %24 = tpu.assume_multiple %23, 8 : i32
    %25 = arith.index_cast %24 : i32 to index
    %c0_21 = arith.constant 0 : index
    %26 = vector.load %arg8[%25, %c0_21] : memref<32x128xf32, #tpu.memory_space<vmem>>, vector<8x128xf32>
    %c0_22 = arith.constant 0 : index
    %c0_23 = arith.constant 0 : index
    %27 = vector.load %arg4[%c0_22, %c0_23] : memref<128x128xf32, #tpu.memory_space<vmem>>, vector<128x128xf32>
    %cst_24 = arith.constant dense<0.000000e+00> : vector<8x128xf32>
    %28 = tpu.matmul %20, %27, %cst_24 {dimension_numbers = #tpu.dot_dimension_numbers<[1], [0], [0], [1], [0, 0, 1, 1], [], []>} : vector<8x128xf32>, vector<128x128xf32>, vector<8x128xf32> -> vector<8x128xf32>
    %29 = arith.addf %26, %28 : vector<8x128xf32>
    %30 = math.tanh %29 : vector<8x128xf32>
    %31 = arith.index_cast %24 : i32 to index
    %c0_25 = arith.constant 0 : index
    %32 = vector.load %arg6[%31, %c0_25] : memref<32x128xf32, #tpu.memory_space<vmem>>, vector<8x128xf32>
    tpu.vector_store %arg6[%31, %c0_25], %30 {strides = array<i32>} : memref<32x128xf32, #tpu.memory_space<vmem>>, vector<8x128xf32>,
    %c2_i32 = arith.constant 2 : i32
    %c8_i32_26 = arith.constant 8 : i32
    %33 = arith.muli %c2_i32, %c8_i32_26 : i32
    %34 = tpu.assume_multiple %33, 8 : i32
    %35 = arith.index_cast %34 : i32 to index
    %c0_27 = arith.constant 0 : index
    %36 = vector.load %arg8[%35, %c0_27] : memref<32x128xf32, #tpu.memory_space<vmem>>, vector<8x128xf32>
    %c0_28 = arith.constant 0 : index
    %c0_29 = arith.constant 0 : index
    %37 = vector.load %arg4[%c0_28, %c0_29] : memref<128x128xf32, #tpu.memory_space<vmem>>, vector<128x128xf32>
    %cst_30 = arith.constant dense<0.000000e+00> : vector<8x128xf32>
    %38 = tpu.matmul %30, %37, %cst_30 {dimension_numbers = #tpu.dot_dimension_numbers<[1], [0], [0], [1], [0, 0, 1, 1], [], []>} : vector<8x128xf32>, vector<128x128xf32>, vector<8x128xf32> -> vector<8x128xf32>
    %39 = arith.addf %36, %38 : vector<8x128xf32>
    %40 = math.tanh %39 : vector<8x128xf32>
    %41 = arith.index_cast %34 : i32 to index
    %c0_31 = arith.constant 0 : index
    %42 = vector.load %arg6[%41, %c0_31] : memref<32x128xf32, #tpu.memory_space<vmem>>, vector<8x128xf32>
    tpu.vector_store %arg6[%41, %c0_31], %40 {strides = array<i32>} : memref<32x128xf32, #tpu.memory_space<vmem>>, vector<8x128xf32>,
    %c3_i32 = arith.constant 3 : i32
    %c8_i32_32 = arith.constant 8 : i32
    %43 = arith.muli %c3_i32, %c8_i32_32 : i32
    %44 = tpu.assume_multiple %43, 8 : i32
    %45 = arith.index_cast %44 : i32 to index
    %c0_33 = arith.constant 0 : index
    %46 = vector.load %arg8[%45, %c0_33] : memref<32x128xf32, #tpu.memory_space<vmem>>, vector<8x128xf32>
    %c0_34 = arith.constant 0 : index
    %c0_35 = arith.constant 0 : index
    %47 = vector.load %arg4[%c0_34, %c0_35] : memref<128x128xf32, #tpu.memory_space<vmem>>, vector<128x128xf32>
    %cst_36 = arith.constant dense<0.000000e+00> : vector<8x128xf32>
    %48 = tpu.matmul %40, %47, %cst_36 {dimension_numbers = #tpu.dot_dimension_numbers<[1], [0], [0], [1], [0, 0, 1, 1], [], []>} : vector<8x128xf32>, vector<128x128xf32>, vector<8x128xf32> -> vector<8x128xf32>
    %49 = arith.addf %46, %48 : vector<8x128xf32>
    %50 = math.tanh %49 : vector<8x128xf32>
    %51 = arith.index_cast %44 : i32 to index
    %c0_37 = arith.constant 0 : index
    %52 = vector.load %arg6[%51, %c0_37] : memref<32x128xf32, #tpu.memory_space<vmem>>, vector<8x128xf32>
    tpu.vector_store %arg6[%51, %c0_37], %50 {strides = array<i32>} : memref<32x128xf32, #tpu.memory_space<vmem>>, vector<8x128xf32>,
    %c4_i32 = arith.constant 4 : i32
    %c0_38 = arith.constant 0 : index
    %c0_39 = arith.constant 0 : index
    %53 = vector.load %arg7[%c0_38, %c0_39] : memref<8x128xf32, #tpu.memory_space<vmem>>, vector<8x128xf32>
    tpu.vector_store %arg7[%c0_38, %c0_39], %50 {strides = array<i32>} : memref<8x128xf32, #tpu.memory_space<vmem>>, vector<8x128xf32>,
    return
  }
  func.func @transform_0(%arg0: i32) -> (i32, i32) {
    %c0_i32 = arith.constant 0 : i32
    %c0_i32_0 = arith.constant 0 : i32
    return %arg0, %c0_i32 : i32, i32
  }
  func.func @transform_1(%arg0: i32) -> (i32, i32) {
    %c0_i32 = arith.constant 0 : i32
    %c0_i32_0 = arith.constant 0 : i32
    %c0_i32_1 = arith.constant 0 : i32
    return %c0_i32, %c0_i32_0 : i32, i32
  }
  func.func @transform_2(%arg0: i32) -> (i32, i32) {
    %c0_i32 = arith.constant 0 : i32
    %c0_i32_0 = arith.constant 0 : i32
    %c0_i32_1 = arith.constant 0 : i32
    return %c0_i32, %c0_i32_0 : i32, i32
  }
  func.func @transform_3(%arg0: i32) -> (i32, i32) {
    %c0_i32 = arith.constant 0 : i32
    %c0_i32_0 = arith.constant 0 : i32
    %c0_i32_1 = arith.constant 0 : i32
    return %c0_i32, %c0_i32_0 : i32, i32
  }
  func.func @transform_4(%arg0: i32) -> (i32, i32) {
    %c0_i32 = arith.constant 0 : i32
    %c0_i32_0 = arith.constant 0 : i32
    %c0_i32_1 = arith.constant 0 : i32
    return %c0_i32, %c0_i32_0 : i32, i32
  }
  func.func @transform_5(%arg0: i32) -> (i32, i32) {
    %c0_i32 = arith.constant 0 : i32
    %c0_i32_0 = arith.constant 0 : i32
    return %arg0, %c0_i32 : i32, i32
  }
}

</mosaic_0001>

<bundles_post_ra>
// kernel: tpu_custom_call.1
= control target key start
LH: loop header
LB: loop body
LE: loop exit
PB: predicated region body
PF: predicated region fallthrough
CT: control target
= control target key end

     0   :  { %10 = vsyncpa [#allocation6], 0  ;;  %s1810_s0 = inlined_call_operand.vmem [shape: f32[64,16], index: 0, kind: input, shape index: {}]   ;;  %s1811_s1 = inlined_call_operand.vmem [shape: f32[8,128], index: 1, kind: input, shape index: {}]   ;;  %s1812_s2 = inlined_call_operand.hbm [shape: f32[128,128], index: 2, kind: input, shape index: {}]   ;;  %s1813_s3 = inlined_call_operand.hbm [shape: f32[128,128], index: 3, kind: input, shape index: {}]   ;;  %s1814_s4 = inlined_call_operand.vmem [shape: f32[1,128], index: 4, kind: input, shape index: {}]   ;;  %s1815_s5 = inlined_call_operand.hbm [shape: f32[64,128], index: 5, kind: output, shape index: {}]  }
   0x1   :  { %11 = vsyncpa [#allocation9], 0 }
   0x2   :  { %12 = vsyncpa [#allocation7], 0 }
   0x3   :  { %14 = vsyncpa [#allocation7 + $0x1], 0  ;;  %s1518_s18 = smov 0   ;;  %s1520_s19 = smov 0  }
   0x4   :  { %s1522_s20 = smov 0   ;;  %s1524_s21 = smov 0  }
   0x5 LB: > { %s1539_s22 = sadd.s32 4294967295, %s1475_s21   ;;  %s857_s23 = sadd.s32 4294967294, %s1475_s21   ;;  %s1475_s21 = sphi %s1524_s21, %s1834_s21   ;;  %s1471_s20 = sphi %s1522_s20, %s1833_s20   ;;  %s1467_s19 = sphi %s1520_s19, %s1832_s19   ;;  %s1463_s18 = sphi %s1518_s18, %s1831_s18  }
   0x6   : > { %s1543_s24 = sadd.s32 1, %s1475_s21   ;;  %s137_s25 = sadd.s32 1, %s1471_s20 }
   0x7   : > { %s134_s26 = ssub.s32 %s1475_s21, %s1543_s24  ;;  %p147_p0 = scmp.ne.s32.totalorder %s1471_s20, %s1467_s19 }
   0x8   : > { %p135_p1 = scmp.eq.s32.totalorder %s134_s26, 0  ;;  %p148_p2 = scmp.eq.s32.totalorder %s1539_s22, 1 }
   0x9   : > { %p153_p3 = scmp.ne.s32.totalorder %s1467_s19, %s1463_s18  ;;  %p154_p4 = scmp.eq.s32.totalorder %s857_s23, 1 }
   0xa   : > { %s1554_s27 = scalar_select %p135_p1, %s1471_s20, %s137_s25  }
   0xb   : > { %p1556_p5 = por %p148_p2, %p147_p0  ;;  %p1560_p6 = por %p154_p4, %p153_p3 }
   0xc   : > { %p858_p7 = scmp.ge.s32.totalorder %s1475_s21, 1  ;;  %p161_p8 = scmp.lt.s32.totalorder %s1475_s21, 3 }
   0xd   : > { %s1819_s28 = scalar_select %p1556_p5, 1, 0 }
   0xe   : > { %s1820_s29 = scalar_select %p1560_p6, 1, 0 }
   0xf   : > { %p1816_p10 = scmp.eq.s32.totalorder %s1539_s22, 0  ;;  %p1568_p11 = pnand %p858_p7, %p161_p8 }
  0x10   : > { %s1477_s6 = smov [#allocation5]   ;;  %s1478_s9 = smov [#allocation8]  }
  0x11   : > { %s1821_s30 = scalar_select %p1568_p11, 1, 0 }
  0x12   : > { %s176_s7 = sshll.u32 %s1477_s6, 4  ;;  %p1283_p12 = pneg %p1568_p11  ;;  %s177_s7 = int_to_ptr.vmem [resolvable:$true] %s176_s7 }
  0x13   : > { %s189_s10 = sshll.u32 %s1478_s9, 4  ;;  %s1349_s13 = scalar_lea.hbm %s1812_s2, 2048  ;;  %s1580_s10 = int_to_ptr.vmem [resolvable:$true] %s189_s10 }
  0x14   : > { %p1576_p13 = pnand %p1816_p10, %p1283_p12  ;;  %p1350_p0 = scmp.ne.s32.totalorder %s1812_s2, %s1349_s13 }
  0x15   : > { %p1356_p4 = scmp.lt.u32.totalorder %s1349_s13, %s1812_s2 }
  0x16   : > { %p1351_p1 = pneg %p1576_p13 }
  0x18   : > { %p1352_p2 = pnand %p1351_p1, %p1350_p0 }
  0x1a   : > { %p1353_p3 = pneg %p1352_p2 }
  0x1c   : > { %p1358_p7 = pnand %p1356_p4, %p1353_p3 }
  0x1e   : > { %1361 = shalt.err (!%p1358_p7)
}
  0x1f   : > { %s1362_s23 = scalar_lea.vmem %s177_s7, 2048  ;;  %p1370_p10 = scmp.lt.s32.totalorder %s177_s7, %s177_s7 }
  0x20   : > { %p1363_p8 = scmp.ne.s32.totalorder %s177_s7, %s1362_s23  ;;  %p1371_p6 = scmp.lt.s32.totalorder %s1362_s23, %s1362_s23 }
  0x22   : > { %p1365_p12 = pnand %p1363_p8, %p1351_p1  ;;  %p1372_p5 = por %p1371_p6, %p1370_p10 }
  0x24   : > { %p1366_p9 = pneg %p1365_p12 }
  0x26   : > { %p1373_p11 = pnand %p1372_p5, %p1366_p9 }
  0x28   : > { %1376 = shalt.err (!%p1373_p11)
}
  0x29   : > { %s1479_s25 = smov 128   ;;  %s1480_s26 = smov 8  }
  0x2a   : > { %1286 = dma.hbm_to_vmem [thread:$0]  (!%p1576_p13), %s1812_s2, 2048, %s177_s7, [#allocation6], %s1479_s25, %s1479_s25, %s1480_s26  }
  0x2b   : > { %s1377_s13 = scalar_lea.hbm %s1813_s3, 2048 }
  0x2c   : > { %p1378_p0 = scmp.ne.s32.totalorder %s1813_s3, %s1377_s13  ;;  %p1384_p9 = scmp.lt.u32.totalorder %s1377_s13, %s1813_s3 }
  0x2e   : > { %p1380_p5 = pnand %p1378_p0, %p1351_p1 }
  0x30   : > { %p1381_p6 = pneg %p1380_p5 }
  0x32   : > { %p1386_p10 = pnand %p1384_p9, %p1381_p6 }
  0x34   : > { %1389 = shalt.err (!%p1386_p10)
}
  0x35   : > { %s1390_s7 = scalar_lea.vmem %s1580_s10, 2048  ;;  %p1398_p4 = scmp.lt.s32.totalorder %s1580_s10, %s1580_s10 }
  0x36   : > { %p1391_p11 = scmp.ne.s32.totalorder %s1580_s10, %s1390_s7  ;;  %p1399_p7 = scmp.lt.s32.totalorder %s1390_s7, %s1390_s7 }
  0x38   : > { %p1393_p2 = pnand %p1391_p11, %p1351_p1  ;;  %p1400_p8 = por %p1399_p7, %p1398_p4 }
  0x3a   : > { %p1394_p3 = pneg %p1393_p2 }
  0x3c   : > { %p1401_p12 = pnand %p1400_p8, %p1394_p3 }
  0x3e   : > { %1404 = shalt.err (!%p1401_p12)
}
  0x3f   : > { %1289 = dma.hbm_to_vmem [thread:$0]  (!%p1576_p13), %s1813_s3, 2048, %s1580_s10, [#allocation9], %s1479_s25, %s1479_s25, %s1480_s26  }
  0x40   : > { %p1823_p0 = scmp.ne.s32.totalorder %s1821_s30, 0 }
  0x41   : > { %p1824_p5 = scmp.eq.s32.totalorder (!%p1823_p0), %s1539_s22, 0 }
  0x42   : > { %217 = sbr.rel (%p1823_p0) target bundleno = 1042 (0x412), region = 40 }
  0x49   : > { %1450 = dma.done.wait (%p1824_p5), [#allocation6], 2048   ;;  %p1825_p1 = pmov %p1824_p5 }
  0x4b   : > { %1452 = vsyncadd (%p1825_p1), [#allocation6], 4294965248  ;;  %p1826_p6 = pmov %p1825_p1 }
  0x4c   : > { %p1827_p9 = pmov %p1825_p1 }
  0x4d   : > { %1454 = dma.done.wait (%p1826_p6), [#allocation9], 2048  }
  0x4e   : > { %1456 = vsyncadd (%p1827_p9), [#allocation9], 4294965248  ;;  %s246_s8 = sand.u32 1, %s1467_s19   ;;  %s866_s10 = sshll.u32 %s1539_s22, 2 }
  0x4f   : > { %s865_s30 = sshll.u32 %s246_s8, 5  ;;  %p250_p13 = scmp.lt.s32.totalorder %s866_s10, 7 }
  0x50   : > { %s1648_s12 = scalar_lea.vmem [#allocation10], %s865_s30  ;;  %p1828_p10 = scmp.ne.s32.totalorder %s1539_s22, 0 }
  0x51   : > { %s1836_s10 = smov (!%p250_p13, %s866_s10), 7  ;;  %v260_v0 = vld [vmem:[%s1811_s1] sm:$0xff] (!%p1828_p10)  ;;  %v1481_v1 = vmov (!%p1828_p10), 0.0  }
  0x52   : > { %s867_s25 = sshll.u32 %s1836_s10, 3  ;;  %259 = sbr.rel (%p1828_p10) target bundleno = 89 (0x59), region = 52  ;;  %261 = vst [vmem:[#allocation2] sm:$0xff] (!%p1828_p10), %v260_v0  ;;  %262 = vst [vmem:[#allocation4] sm:$0xff] (!%p1828_p10), %v1481_v1 }
  0x53   : > { %s1646_s11 = scalar_lea.vmem %s1810_s0, %s867_s25  ;;  %263 = vst [vmem:[#allocation4 + $0x8] sm:$0xff] (!%p1828_p10), %v1481_v1  ;;  %264 = vst [vmem:[#allocation4 + $0x10] sm:$0xff] (!%p1828_p10), %v1481_v1 }
  0x54   : > { %265 = vst [vmem:[#allocation4 + $0x18] sm:$0xff] (!%p1828_p10), %v1481_v1 }
  0x59 PF: > { %v279_v2 = vld [vmem:[#allocation5] sm:$0xff]  ;;  %v280_v3 = vld [vmem:[#allocation5 + $0x8] sm:$0xff]  ;;  %v1482_v6 = vmov 0.0|0.0   ;;  %v281_v8 = vld [vmem:[#allocation5 + $0x10] sm:$0xff]  ;;  %vm1483_vm0 = vmmov 0   ;;  %v1484_v15 = vmov 0.0  }
  0x5a   : > { %v393_v4 = vld [vmem:[#allocation8] sm:$0xff]  ;;  %v1145_v5 = vpack.c.bf16 %v280_v3, %v279_v2  ;;  %1177 = vmatprep.subr.bf16.mxu1 %v1482_v6  ;;  %v394_v7 = vld [vmem:[#allocation8 + $0x8] sm:$0xff]  ;;  %v282_v9 = vld [vmem:[#allocation5 + $0x18] sm:$0xff]  ;;  %1037 = vmatprep.mubr.msk.f32.mxu1 %vm1483_vm0, %v1484_v15  ;;  %vm270_vm1 = vcmask 130048   ;;  %s878_s17 = sshll.u32 %s1539_s22, 9  ;;  %s773_s7 = sshll.u32 %s1648_s12, 4  ;;  %s1764_s7 = int_to_ptr.vmem [resolvable:$true] %s773_s7 }
  0x5b   : > { %v1656_v10 = vpack.c.bf16 %v394_v7, %v393_v4  ;;  %v1149_v11 = vpack.c.bf16 %v282_v9, %v281_v8  ;;  %v395_v12 = vld [vmem:[#allocation8 + $0x10] sm:$0xff]  ;;  %v396_v13 = vld [vmem:[#allocation8 + $0x18] sm:$0xff]  ;;  %v283_v14 = vld [vmem:[#allocation5 + $0x20] sm:$0xff]  ;;  %s1762_s10 = scalar_lea.hbm %s1815_s5, %s878_s17  ;;  %s1769_s30 = scalar_lea.sflag [#allocation7], %s246_s8 }
  0x5c   : > { %1146 = vmatprep.subr.bf16.mxu0 %v1145_v5  ;;  %v284_v16 = vld [vmem:[#allocation5 + $0x28] sm:$0xff]  ;;  %v1661_v17 = vpack.c.bf16 %v396_v13, %v395_v12  ;;  %v397_v19 = vld [vmem:[#allocation8 + $0x20] sm:$0xff]  ;;  %v285_v21 = vld [vmem:[#allocation5 + $0x30] sm:$0xff]  ;;  %s1405_s25 = scalar_lea.vmem %s1764_s7, 512  ;;  %p1829_p2 = scmp.ne.s32.totalorder %s1819_s28, 0 }
  0x5d   : > { %1148 = vmatpush3.bf16.msra.mxu0 %v1145_v5  ;;  %1179 = vmatpush3.bf16.msra.mxu1 %v1656_v10  ;;  %v1153_v18 = vpack.c.bf16 %v284_v16, %v283_v14  ;;  %v398_v20 = vld [vmem:[#allocation8 + $0x28] sm:$0xff]  ;;  %v286_v22 = vld [vmem:[#allocation5 + $0x38] sm:$0xff]  ;;  %v399_v25 = vld [vmem:[#allocation8 + $0x30] sm:$0xff]  ;;  %p1406_p11 = scmp.ne.s32.totalorder %s1764_s7, %s1405_s25  ;;  %s1485_s22 = smov [#allocation10]  }
  0x5e   : > { %1150 = vmatprep.subr.bf16.mxu0 %v1149_v11  ;;  %1180 = vmatprep.subr.bf16.mxu1 %v1482_v6  ;;  %v1665_v23 = vpack.c.bf16 %v398_v20, %v397_v19  ;;  %v1157_v24 = vpack.c.bf16 %v286_v22, %v285_v21  ;;  %v400_v26 = vld [vmem:[#allocation8 + $0x38] sm:$0xff]  ;;  %v287_v27 = vld [vmem:[#allocation5 + $0x40] sm:$0xff]  ;;  %v288_v28 = vld [vmem:[#allocation5 + $0x48] sm:$0xff]  ;;  %s1409_s26 = sshll.u32 %s1485_s22, 4  ;;  %s1410_s26 = int_to_ptr.vmem [resolvable:$false] %s1409_s26 }
  0x5f   : > { %v266_v29 = vld [vmem:[%s1646_s11] sm:$0xff]  ;;  %v267_v30 = vld [vmem:[%s1646_s11 + $0x8] sm:$0xff]  ;;  %v1672_v31 = vpack.c.bf16 %v400_v26, %v399_v25  ;;  %v1161_v32 = vpack.c.bf16 %v288_v28, %v287_v27  ;;  %v402_v34 = vld [vmem:[#allocation8 + $0x48] sm:$0xff]  ;;  %p1407_p3 = pnand %p1406_p11, %p1829_p2  ;;  %s1411_s9 = scalar_lea.vmem %s1410_s26, 1024 }
  0x60   : > { %271 = vst.msk [vmem:[#allocation4] sm:$0xff] %vm270_vm1, %v266_v29  ;;  %272 = vst.msk [vmem:[#allocation4 + $0x8] sm:$0xff] %vm270_vm1, %v267_v30  ;;  %v401_v33 = vld [vmem:[#allocation8 + $0x40] sm:$0xff]  ;;  %v289_v35 = vld [vmem:[#allocation5 + $0x50] sm:$0xff]  ;;  %p1412_p7 = scmp.lt.s32.totalorder %s1764_s7, %s1410_s26  ;;  %p1413_p8 = scmp.lt.s32.totalorder %s1411_s9, %s1405_s25 }
  0x61   : > { %1152 = vmatpush3.bf16.msra.mxu0 %v1149_v11  ;;  %1182 = vmatpush3.bf16.msra.mxu1 %v1661_v17  ;;  %v290_v36 = vld [vmem:[#allocation5 + $0x58] sm:$0xff]  ;;  %v1677_v37 = vpack.c.bf16 %v402_v34, %v401_v33  ;;  %v403_v39 = vld [vmem:[#allocation8 + $0x50] sm:$0xff]  ;;  %v291_v41 = vld [vmem:[#allocation5 + $0x60] sm:$0xff]  ;;  %p1408_p4 = pneg %p1407_p3 }
  0x62   : > { %1154 = vmatprep.subr.bf16.mxu0 %v1153_v18  ;;  %1183 = vmatprep.subr.bf16.mxu1 %v1482_v6  ;;  %v1165_v38 = vpack.c.bf16 %v290_v36, %v289_v35  ;;  %v404_v40 = vld [vmem:[#allocation8 + $0x58] sm:$0xff]  ;;  %v292_v42 = vld [vmem:[#allocation5 + $0x68] sm:$0xff]  ;;  %v405_v46 = vld [vmem:[#allocation8 + $0x60] sm:$0xff]  ;;  %p1414_p12 = por %p1413_p8, %p1412_p7 }
  0x63   : > { %v1681_v44 = vpack.c.bf16 %v404_v40, %v403_v39  ;;  %v1169_v45 = vpack.c.bf16 %v292_v42, %v291_v41  ;;  %v406_v47 = vld [vmem:[#allocation8 + $0x68] sm:$0xff]  ;;  %v293_v48 = vld [vmem:[#allocation5 + $0x70] sm:$0xff]  ;;  %v294_v49 = vld [vmem:[#allocation5 + $0x78] sm:$0xff] }
  0x64   : > { %v1685_v50 = vpack.c.bf16 %v406_v47, %v405_v46  ;;  %v1173_v51 = vpack.c.bf16 %v294_v49, %v293_v48  ;;  %v407_v52 = vld [vmem:[#allocation8 + $0x70] sm:$0xff]  ;;  %v408_v53 = vld [vmem:[#allocation8 + $0x78] sm:$0xff]  ;;  %v268_v57 = vld [vmem:[%s1646_s11 + $0x10] sm:$0xff]  ;;  %p1415_p0 = pnand %p1414_p12, %p1408_p4 }
  0x65   : > { %1156 = vmatpush3.bf16.msra.mxu0 %v1153_v18  ;;  %1185 = vmatpush3.bf16.msra.mxu1 %v1665_v23  ;;  %v1689_v54 = vpack.c.bf16 %v408_v53, %v407_v52  ;;  %v391_v56 = vld [vmem:[#allocation2] sm:$0xff]  ;;  %273 = vst.msk [vmem:[#allocation4 + $0x10] sm:$0xff] %vm270_vm1, %v268_v57  ;;  %v269_v58 = vld [vmem:[%s1646_s11 + $0x18] sm:$0xff] }
  0x66   : > { %1158 = vmatprep.subr.bf16.mxu0 %v1157_v24  ;;  %1186 = vmatprep.subr.bf16.mxu1 %v1482_v6  ;;  %274 = vst.msk [vmem:[#allocation4 + $0x18] sm:$0xff] %vm270_vm1, %v269_v58  ;;  %v869_v61 = vld [vmem:[%s1814_s4] ss:$0 sm:$0xff] }
  0x67   : > { %v275_v43 = vld [vmem:[#allocation4] sm:$0xff]  ;;  %v276_v55 = vld [vmem:[#allocation4 + $0x8] sm:$0xff] }
  0x68   : > { %999 = vmatprep.mubr.f32.mxu0 %v275_v43 }
  0x69   : > { %1160 = vmatpush3.bf16.msra.mxu0 %v1157_v24  ;;  %1188 = vmatpush3.bf16.msra.mxu1 %v1672_v31 }
  0x6a   : > { %1162 = vmatprep.subr.bf16.mxu0 %v1161_v32  ;;  %1189 = vmatprep.subr.bf16.mxu1 %v1482_v6 }
  0x6c   : > { %v277_v59 = vld [vmem:[#allocation4 + $0x10] sm:$0xff] }
  0x6d   : > { %1164 = vmatpush3.bf16.msra.mxu0 %v1161_v32  ;;  %1191 = vmatpush3.bf16.msra.mxu1 %v1677_v37  ;;  %v278_v60 = vld [vmem:[#allocation4 + $0x18] sm:$0xff] }
  0x6e   : > { %1166 = vmatprep.subr.bf16.mxu0 %v1165_v38  ;;  %1192 = vmatprep.subr.bf16.mxu1 %v1482_v6 }
  0x71   : > { %1168 = vmatpush3.bf16.msra.mxu0 %v1165_v38  ;;  %1194 = vmatpush3.bf16.msra.mxu1 %v1681_v44 }
  0x72   : > { %1170 = vmatprep.subr.bf16.mxu0 %v1169_v45  ;;  %1195 = vmatprep.subr.bf16.mxu1 %v1482_v6 }
  0x75   : > { %1172 = vmatpush3.bf16.msra.mxu0 %v1169_v45  ;;  %1197 = vmatpush3.bf16.msra.mxu1 %v1685_v50 }
  0x76   : > { %1174 = vmatprep.subr.bf16.mxu0 %v1173_v51  ;;  %1198 = vmatprep.subr.bf16.mxu1 %v1482_v6 }
  0x79   : > { %1176 = vmatpush3.bf16.msra.mxu0 %v1173_v51  ;;  %1200 = vmatpush3.bf16.msra.mxu1 %v1689_v54 }
  0x7a   : > { %1201 = vmatprep.subr.bf16.mxu0 %v1482_v6  ;;  %1225 = vmatprep.subr.bf16.mxu1 %v1482_v6 }
  0x7c   : > { %1000 = vmatmul.mubr.f32.vlgmr.msra.gmra.mrb[0].mxu0 %v276_v55  ;;  %1038 = vmatmul.mubr.f32.vlgmr.msra.gmra.mrb[0].mxu1 %v391_v56 }
  0x7d   : > { %1203 = vmatpush3.bf16.msra.mxu0 %v1656_v10  ;;  %1227 = vmatpush3.bf16.msra.mxu1 %v1656_v10 }
  0x7e   : > { %1204 = vmatprep.subr.bf16.mxu0 %v1482_v6  ;;  %1228 = vmatprep.subr.bf16.mxu1 %v1482_v6 }
  0x7f   : > { %1107 = vmatprep.mubr.msk.f32.mxu1 %vm1483_vm0, %v1484_v15  ;;  %1002 = vmatprep.mubr.f32.mxu0 %v277_v59 }
  0x80   : > { %1003 = vmatmul.mubr.f32.gmra.mrb[2].mxu0 %v278_v60 }
  0x81   : > { %1206 = vmatpush3.bf16.msra.mxu0 %v1661_v17  ;;  %1230 = vmatpush3.bf16.msra.mxu1 %v1661_v17 }
  0x82   : > { %1207 = vmatprep.subr.bf16.mxu0 %v1482_v6  ;;  %1231 = vmatprep.subr.bf16.mxu1 %v1482_v6 }
  0x83   : > { %1072 = vmatprep.mubr.msk.f32.mxu0 %vm1483_vm0, %v1484_v15 }
  0x85   : > { %1209 = vmatpush3.bf16.msra.mxu0 %v1665_v23  ;;  %1233 = vmatpush3.bf16.msra.mxu1 %v1665_v23 }
  0x86   : > { %1210 = vmatprep.subr.bf16.mxu0 %v1482_v6  ;;  %1234 = vmatprep.subr.bf16.mxu1 %v1482_v6 }
  0x89   : > { %1212 = vmatpush3.bf16.msra.mxu0 %v1672_v31  ;;  %1236 = vmatpush3.bf16.msra.mxu1 %v1672_v31 }
  0x8a   : > { %1213 = vmatprep.subr.bf16.mxu0 %v1482_v6  ;;  %1237 = vmatprep.subr.bf16.mxu1 %v1482_v6 }
  0x8d   : > { %1215 = vmatpush3.bf16.msra.mxu0 %v1677_v37  ;;  %1239 = vmatpush3.bf16.msra.mxu1 %v1677_v37 }
  0x8e   : > { %1216 = vmatprep.subr.bf16.mxu0 %v1482_v6  ;;  %1240 = vmatprep.subr.bf16.mxu1 %v1482_v6 }
  0x91   : > { %1218 = vmatpush3.bf16.msra.mxu0 %v1681_v44  ;;  %1242 = vmatpush3.bf16.msra.mxu1 %v1681_v44 }
  0x92   : > { %1219 = vmatprep.subr.bf16.mxu0 %v1482_v6  ;;  %1243 = vmatprep.subr.bf16.mxu1 %v1482_v6 }
  0x95   : > { %1221 = vmatpush3.bf16.msra.mxu0 %v1685_v50  ;;  %1245 = vmatpush3.bf16.msra.mxu1 %v1685_v50 }
  0x96   : > { %1222 = vmatprep.subr.bf16.mxu0 %v1482_v6  ;;  %1246 = vmatprep.subr.bf16.mxu1 %v1482_v6 }
  0x99   : > { %1224 = vmatpush3.bf16.msra.mxu0 %v1689_v54  ;;  %1248 = vmatpush3.bf16.msra.mxu1 %v1689_v54 }
  0x9a   : > { %1249 = vmatprep.subr.bf16.mxu0 %v1482_v6 }
 0x14f   : > { %v1001_v62 = vpop.f32.mrb[0].mxu0  ;;  %v475_v63 = vpop.f32.mrb[0].mxu1 }
 0x150   : > { %v368_v0 = vpop.f32.mrb[1].mxu0  ;;  %v1039_v1 = vpop.f32.mrb[1].mxu1  ;;  %v374_v8 = vadd.f32 %v1001_v62, %v869_v61 }
 0x151   : > { %v369_v2 = vadd.f32 %v869_v61, %v368_v0 }
 0x153   : > { %v479_v3 = vadd.f32 %v475_v63, %v369_v2  ;;  %v1004_v5 = vpop.f32.mrb[2].mxu0 }
 0x154   : > { %v378_v7 = vpop.f32.mrb[3].mxu0 }
 0x155   : > { %1341 = vtanh.f32 %v479_v3  ;;  %v379_v13 = vadd.f32 %v869_v61, %v378_v7 }
 0x15f   : > { %v1342_v4 = vpop.eup %1341 }
 0x160   : > { %481 = vst [vmem:[%s1648_s12] sm:$0xff] %v1342_v4  ;;  %1073 = vmatmul.mubr.f32.vlgmr.msra.gmra.mrb[4].mxu0 %v1342_v4 }
 0x161   : > { %1251 = vmatpush3.bf16.msra.mxu0 %v1656_v10  ;;  %1142 = vmatprep.mubr.msk.f32.mxu0 %vm1483_vm0, %v1484_v15 }
 0x162   : > { %1252 = vmatprep.subr.bf16.mxu0 %v1482_v6 }
 0x165   : > { %1254 = vmatpush3.bf16.msra.mxu0 %v1661_v17  ;;  %v384_v17 = vadd.f32 %v1004_v5, %v869_v61 }
 0x166   : > { %1255 = vmatprep.subr.bf16.mxu0 %v1482_v6 }
 0x169   : > { %1257 = vmatpush3.bf16.msra.mxu0 %v1665_v23 }
 0x16a   : > { %1258 = vmatprep.subr.bf16.mxu0 %v1482_v6 }
 0x16d   : > { %1260 = vmatpush3.bf16.msra.mxu0 %v1672_v31 }
 0x16e   : > { %1261 = vmatprep.subr.bf16.mxu0 %v1482_v6 }
 0x171   : > { %1263 = vmatpush3.bf16.msra.mxu0 %v1677_v37 }
 0x172   : > { %1264 = vmatprep.subr.bf16.mxu0 %v1482_v6 }
 0x175   : > { %1266 = vmatpush3.bf16.msra.mxu0 %v1681_v44 }
 0x176   : > { %1267 = vmatprep.subr.bf16.mxu0 %v1482_v6 }
 0x179   : > { %1269 = vmatpush3.bf16.msra.mxu0 %v1685_v50 }
 0x17a   : > { %1270 = vmatprep.subr.bf16.mxu0 %v1482_v6 }
 0x17d   : > { %1272 = vmatpush3.bf16.msra.mxu0 %v1689_v54 }
 0x233   : > { %v566_v9 = vpop.f32.mrb[4].mxu0 }
 0x234   : > { %v570_v10 = vadd.f32 %v566_v9, %v374_v8  ;;  %v1074_v11 = vpop.f32.mrb[5].mxu0 }
 0x236   : > { %1343 = vtanh.f32 %v570_v10 }
 0x240   : > { %v1344_v12 = vpop.eup %1343 }
 0x241   : > { %870 = vst [vmem:[%s1648_s12 + $0x8] sm:$0xff] %v1344_v12  ;;  %1108 = vmatmul.mubr.f32.vlgmr.msra.gmra.mrb[2].mxu1 %v1344_v12 }
 0x314   : > { %v658_v14 = vpop.f32.mrb[2].mxu1 }
 0x315   : > { %v662_v15 = vadd.f32 %v658_v14, %v379_v13  ;;  %v1109_v6 = vpop.f32.mrb[3].mxu1 }
 0x317   : > { %1345 = vtanh.f32 %v662_v15 }
 0x321   : > { %v1346_v16 = vpop.eup %1345 }
 0x322   : > { %871 = vst [vmem:[%s1648_s12 + $0x10] sm:$0xff] %v1346_v16  ;;  %1143 = vmatmul.mubr.f32.vlgmr.msra.gmra.mrb[6].mxu0 %v1346_v16 }
 0x3f5   : > { %v750_v18 = vpop.f32.mrb[6].mxu0 }
 0x3f6   : > { %v754_v19 = vadd.f32 %v750_v18, %v384_v17  ;;  %v1144_v20 = vpop.f32.mrb[7].mxu0 }
 0x3f8   : > { %1347 = vtanh.f32 %v754_v19 }
 0x402   : > { %v1348_v21 = vpop.eup %1347 }
 0x403   : > { %872 = vst [vmem:[%s1648_s12 + $0x18] sm:$0xff] %v1348_v21  ;;  %758 = vst [vmem:[#allocation2] sm:$0xff] %v1348_v21 }
 0x404   : > { %1418 = shalt.err (!%p1415_p0)
}
 0x405   : > { %s1419_s8 = scalar_lea.hbm %s1762_s10, 512  ;;  %s1423_s13 = scalar_lea.hbm %s1815_s5, 1024 }
 0x406   : > { %p1420_p5 = scmp.ne.s32.totalorder %s1762_s10, %s1419_s8  ;;  %p1424_p9 = scmp.lt.u32.totalorder %s1762_s10, %s1815_s5 }
 0x407   : > { %p1425_p13 = scmp.lt.u32.totalorder %s1423_s13, %s1419_s8  ;;  %p1427_p11 = scmp.lt.u32.totalorder %s1419_s8, %s1762_s10 }
 0x408   : > { %p1421_p1 = pnand %p1420_p5, %p1829_p2 }
 0x409   : > { %p1426_p10 = por %p1425_p13, %p1424_p9 }
 0x40a   : > { %p1422_p6 = pneg %p1421_p1 }
 0x40b   : > { %p1428_p3 = por %p1427_p11, %p1426_p10 }
 0x40d   : > { %p1429_p4 = pnand %p1428_p3, %p1422_p6 }
 0x40f   : > { %1432 = shalt.err (!%p1429_p4)
}
 0x410   : > { %s1486_s16 = smov 128   ;;  %s1487_s17 = smov 8  }
 0x411   : > { %1281 = dma.vmem_to_hbm [thread:$0]  (%p1829_p2), %s1764_s7, 512, %s1762_s10, %s1769_s30, %s1486_s16, %s1486_s16, %s1487_s17  }
 0x412 PF: > { %p1298_p7 = scmp.ge.s32.totalorder %s1475_s21, 2  ;;  %s788_s23 = sand.u32 1, %s1463_s18  }
 0x413   : > { %p1830_p8 = scmp.ne.s32.totalorder %s1820_s29, 0  ;;  %s789_s6 = scalar_lea.sflag [#allocation7], %s788_s23 }
 0x415   : > { %p1291_p12 = pnand %p1298_p7, %p1830_p8 }
 0x417   : > { %1458 = dma.done.wait (!%p1291_p12), %s789_s6, 512  }
 0x418   : > { %1460 = vsyncadd (!%p1291_p12), %s789_s6, 4294966784  ;;  %p17_p0 = scmp.ge.s32.totalorder %s1543_s24, 4   ;;  %s1831_s18 = smov %s1467_s19 }
 0x419   : > { %s1832_s19 = smov %s1471_s20  ;;  %s1833_s20 = smov %s1554_s27 }
 0x41a   : > { %s1834_s21 = smov %s1543_s24  ;;  %19 = sbr.rel (!%p17_p0) target bundleno = 5 (0x5), region = 94 }
 0x421   :  { %794 = vsyncpa [#allocation6], 1 }
 0x422   :  { %796 = vsyncpa [#allocation6 + $0x1], 1 }
 0x423   :  { %797 = vsyncpa [#allocation9], 1 }
 0x424   :  { %798 = vsyncpa [#allocation7], 1 }
 0x425   :  { %800 = vsyncpa [#allocation7 + $0x1], 1 }

// kernel: tpu_custom_call.1
= control target key start
LH: loop header
LB: loop body
LE: loop exit
PB: predicated region body
PF: predicated region fallthrough
CT: control target
= control target key end

     0   :  { %10 = vsyncpa [#allocation6], 0  ;;  %s1810_s0 = inlined_call_operand.vmem [shape: f32[64,16], index: 0, kind: input, shape index: {}]   ;;  %s1811_s1 = inlined_call_operand.vmem [shape: f32[8,128], index: 1, kind: input, shape index: {}]   ;;  %s1812_s2 = inlined_call_operand.hbm [shape: f32[128,128], index: 2, kind: input, shape index: {}]   ;;  %s1813_s3 = inlined_call_operand.hbm [shape: f32[128,128], index: 3, kind: input, shape index: {}]   ;;  %s1814_s4 = inlined_call_operand.vmem [shape: f32[1,128], index: 4, kind: input, shape index: {}]   ;;  %s1815_s5 = inlined_call_operand.hbm [shape: f32[64,128], index: 5, kind: output, shape index: {}]  }
   0x1   :  { %11 = vsyncpa [#allocation9], 0 }
   0x2   :  { %12 = vsyncpa [#allocation7], 0 }
   0x3   :  { %14 = vsyncpa [#allocation7 + $0x1], 0  ;;  %s1518_s18 = smov 0   ;;  %s1520_s19 = smov 0  }
   0x4   :  { %s1522_s20 = smov 0   ;;  %s1524_s21 = smov 0  }
   0x5 LB: > { %s1539_s22 = sadd.s32 4294967295, %s1475_s21   ;;  %s857_s23 = sadd.s32 4294967294, %s1475_s21   ;;  %s1475_s21 = sphi %s1524_s21, %s1834_s21   ;;  %s1471_s20 = sphi %s1522_s20, %s1833_s20   ;;  %s1467_s19 = sphi %s1520_s19, %s1832_s19   ;;  %s1463_s18 = sphi %s1518_s18, %s1831_s18  }
   0x6   : > { %s1543_s24 = sadd.s32 1, %s1475_s21   ;;  %s137_s25 = sadd.s32 1, %s1471_s20 }
   0x7   : > { %s134_s26 = ssub.s32 %s1475_s21, %s1543_s24  ;;  %p147_p0 = scmp.ne.s32.totalorder %s1471_s20, %s1467_s19 }
   0x8   : > { %p135_p1 = scmp.eq.s32.totalorder %s134_s26, 0  ;;  %p148_p2 = scmp.eq.s32.totalorder %s1539_s22, 1 }
   0x9   : > { %p153_p3 = scmp.ne.s32.totalorder %s1467_s19, %s1463_s18  ;;  %p154_p4 = scmp.eq.s32.totalorder %s857_s23, 1 }
   0xa   : > { %s1554_s27 = scalar_select %p135_p1, %s1471_s20, %s137_s25  }
   0xb   : > { %p1556_p5 = por %p148_p2, %p147_p0  ;;  %p1560_p6 = por %p154_p4, %p153_p3 }
   0xc   : > { %p858_p7 = scmp.ge.s32.totalorder %s1475_s21, 1  ;;  %p161_p8 = scmp.lt.s32.totalorder %s1475_s21, 3 }
   0xd   : > { %s1819_s28 = scalar_select %p1556_p5, 1, 0 }
   0xe   : > { %s1820_s29 = scalar_select %p1560_p6, 1, 0 }
   0xf   : > { %p1816_p10 = scmp.eq.s32.totalorder %s1539_s22, 0  ;;  %p1568_p11 = pnand %p858_p7, %p161_p8 }
  0x10   : > { %s1477_s6 = smov [#allocation5]   ;;  %s1478_s9 = smov [#allocation8]  }
  0x11   : > { %s1821_s30 = scalar_select %p1568_p11, 1, 0 }
  0x12   : > { %s176_s7 = sshll.u32 %s1477_s6, 4  ;;  %p1283_p12 = pneg %p1568_p11  ;;  %s177_s7 = int_to_ptr.vmem [resolvable:$true] %s176_s7 }
  0x13   : > { %s189_s10 = sshll.u32 %s1478_s9, 4  ;;  %s1349_s13 = scalar_lea.hbm %s1812_s2, 2048  ;;  %s1580_s10 = int_to_ptr.vmem [resolvable:$true] %s189_s10 }
  0x14   : > { %p1576_p13 = pnand %p1816_p10, %p1283_p12  ;;  %p1350_p0 = scmp.ne.s32.totalorder %s1812_s2, %s1349_s13 }
  0x15   : > { %p1356_p4 = scmp.lt.u32.totalorder %s1349_s13, %s1812_s2 }
  0x16   : > { %p1351_p1 = pneg %p1576_p13 }
  0x18   : > { %p1352_p2 = pnand %p1351_p1, %p1350_p0 }
  0x1a   : > { %p1353_p3 = pneg %p1352_p2 }
  0x1c   : > { %p1358_p7 = pnand %p1356_p4, %p1353_p3 }
  0x1e   : > { %1361 = shalt.err (!%p1358_p7)
}
  0x1f   : > { %s1362_s23 = scalar_lea.vmem %s177_s7, 2048  ;;  %p1370_p10 = scmp.lt.s32.totalorder %s177_s7, %s177_s7 }
  0x20   : > { %p1363_p8 = scmp.ne.s32.totalorder %s177_s7, %s1362_s23  ;;  %p1371_p6 = scmp.lt.s32.totalorder %s1362_s23, %s1362_s23 }
  0x22   : > { %p1365_p12 = pnand %p1363_p8, %p1351_p1  ;;  %p1372_p5 = por %p1371_p6, %p1370_p10 }
  0x24   : > { %p1366_p9 = pneg %p1365_p12 }
  0x26   : > { %p1373_p11 = pnand %p1372_p5, %p1366_p9 }
  0x28   : > { %1376 = shalt.err (!%p1373_p11)
}
  0x29   : > { %s1479_s25 = smov 128   ;;  %s1480_s26 = smov 8  }
  0x2a   : > { %1286 = dma.hbm_to_vmem [thread:$0]  (!%p1576_p13), %s1812_s2, 2048, %s177_s7, [#allocation6], %s1479_s25, %s1479_s25, %s1480_s26  }
  0x2b   : > { %s1377_s13 = scalar_lea.hbm %s1813_s3, 2048 }
  0x2c   : > { %p1378_p0 = scmp.ne.s32.totalorder %s1813_s3, %s1377_s13  ;;  %p1384_p9 = scmp.lt.u32.totalorder %s1377_s13, %s1813_s3 }
  0x2e   : > { %p1380_p5 = pnand %p1378_p0, %p1351_p1 }
  0x30   : > { %p1381_p6 = pneg %p1380_p5 }
  0x32   : > { %p1386_p10 = pnand %p1384_p9, %p1381_p6 }
  0x34   : > { %1389 = shalt.err (!%p1386_p10)
}
  0x35   : > { %s1390_s7 = scalar_lea.vmem %s1580_s10, 2048  ;;  %p1398_p4 = scmp.lt.s32.totalorder %s1580_s10, %s1580_s10 }
  0x36   : > { %p1391_p11 = scmp.ne.s32.totalorder %s1580_s10, %s1390_s7  ;;  %p1399_p7 = scmp.lt.s32.totalorder %s1390_s7, %s1390_s7 }
  0x38   : > { %p1393_p2 = pnand %p1391_p11, %p1351_p1  ;;  %p1400_p8 = por %p1399_p7, %p1398_p4 }
  0x3a   : > { %p1394_p3 = pneg %p1393_p2 }
  0x3c   : > { %p1401_p12 = pnand %p1400_p8, %p1394_p3 }
  0x3e   : > { %1404 = shalt.err (!%p1401_p12)
}
  0x3f   : > { %1289 = dma.hbm_to_vmem [thread:$0]  (!%p1576_p13), %s1813_s3, 2048, %s1580_s10, [#allocation9], %s1479_s25, %s1479_s25, %s1480_s26  }
  0x40   : > { %p1823_p0 = scmp.ne.s32.totalorder %s1821_s30, 0 }
  0x41   : > { %p1824_p5 = scmp.eq.s32.totalorder (!%p1823_p0), %s1539_s22, 0 }
  0x42   : > { %217 = sbr.rel (%p1823_p0) target bundleno = 1042 (0x412), region = 40 }
  0x49   : > { %1450 = dma.done.wait (%p1824_p5), [#allocation6], 2048   ;;  %p1825_p1 = pmov %p1824_p5 }
  0x4b   : > { %1452 = vsyncadd (%p1825_p1), [#allocation6], 4294965248  ;;  %p1826_p6 = pmov %p1825_p1 }
  0x4c   : > { %p1827_p9 = pmov %p1825_p1 }
  0x4d   : > { %1454 = dma.done.wait (%p1826_p6), [#allocation9], 2048  }
  0x4e   : > { %1456 = vsyncadd (%p1827_p9), [#allocation9], 4294965248  ;;  %s246_s8 = sand.u32 1, %s1467_s19   ;;  %s866_s10 = sshll.u32 %s1539_s22, 2 }
  0x4f   : > { %s865_s30 = sshll.u32 %s246_s8, 5  ;;  %p250_p13 = scmp.lt.s32.totalorder %s866_s10, 7 }
  0x50   : > { %s1648_s12 = scalar_lea.vmem [#allocation10], %s865_s30  ;;  %p1828_p10 = scmp.ne.s32.totalorder %s1539_s22, 0 }
  0x51   : > { %s1836_s10 = smov (!%p250_p13, %s866_s10), 7  ;;  %v260_v0 = vld [vmem:[%s1811_s1] sm:$0xff] (!%p1828_p10)  ;;  %v1481_v1 = vmov (!%p1828_p10), 0.0  }
  0x52   : > { %s867_s25 = sshll.u32 %s1836_s10, 3  ;;  %259 = sbr.rel (%p1828_p10) target bundleno = 89 (0x59), region = 52  ;;  %261 = vst [vmem:[#allocation2] sm:$0xff] (!%p1828_p10), %v260_v0  ;;  %262 = vst [vmem:[#allocation4] sm:$0xff] (!%p1828_p10), %v1481_v1 }
  0x53   : > { %s1646_s11 = scalar_lea.vmem %s1810_s0, %s867_s25  ;;  %263 = vst [vmem:[#allocation4 + $0x8] sm:$0xff] (!%p1828_p10), %v1481_v1  ;;  %264 = vst [vmem:[#allocation4 + $0x10] sm:$0xff] (!%p1828_p10), %v1481_v1 }
  0x54   : > { %265 = vst [vmem:[#allocation4 + $0x18] sm:$0xff] (!%p1828_p10), %v1481_v1 }
  0x59 PF: > { %v279_v2 = vld [vmem:[#allocation5] sm:$0xff]  ;;  %v280_v3 = vld [vmem:[#allocation5 + $0x8] sm:$0xff]  ;;  %v1482_v6 = vmov 0.0|0.0   ;;  %v281_v8 = vld [vmem:[#allocation5 + $0x10] sm:$0xff]  ;;  %vm1483_vm0 = vmmov 0   ;;  %v1484_v15 = vmov 0.0  }
  0x5a   : > { %v393_v4 = vld [vmem:[#allocation8] sm:$0xff]  ;;  %v1145_v5 = vpack.c.bf16 %v280_v3, %v279_v2  ;;  %1177 = vmatprep.subr.bf16.mxu1 %v1482_v6  ;;  %v394_v7 = vld [vmem:[#allocation8 + $0x8] sm:$0xff]  ;;  %v282_v9 = vld [vmem:[#allocation5 + $0x18] sm:$0xff]  ;;  %1037 = vmatprep.mubr.msk.f32.mxu1 %vm1483_vm0, %v1484_v15  ;;  %vm270_vm1 = vcmask 130048   ;;  %s878_s17 = sshll.u32 %s1539_s22, 9  ;;  %s773_s7 = sshll.u32 %s1648_s12, 4  ;;  %s1764_s7 = int_to_ptr.vmem [resolvable:$true] %s773_s7 }
  0x5b   : > { %v1656_v10 = vpack.c.bf16 %v394_v7, %v393_v4  ;;  %v1149_v11 = vpack.c.bf16 %v282_v9, %v281_v8  ;;  %v395_v12 = vld [vmem:[#allocation8 + $0x10] sm:$0xff]  ;;  %v396_v13 = vld [vmem:[#allocation8 + $0x18] sm:$0xff]  ;;  %v283_v14 = vld [vmem:[#allocation5 + $0x20] sm:$0xff]  ;;  %s1762_s10 = scalar_lea.hbm %s1815_s5, %s878_s17  ;;  %s1769_s30 = scalar_lea.sflag [#allocation7], %s246_s8 }
  0x5c   : > { %1146 = vmatprep.subr.bf16.mxu0 %v1145_v5  ;;  %v284_v16 = vld [vmem:[#allocation5 + $0x28] sm:$0xff]  ;;  %v1661_v17 = vpack.c.bf16 %v396_v13, %v395_v12  ;;  %v397_v19 = vld [vmem:[#allocation8 + $0x20] sm:$0xff]  ;;  %v285_v21 = vld [vmem:[#allocation5 + $0x30] sm:$0xff]  ;;  %s1405_s25 = scalar_lea.vmem %s1764_s7, 512  ;;  %p1829_p2 = scmp.ne.s32.totalorder %s1819_s28, 0 }
  0x5d   : > { %1148 = vmatpush3.bf16.msra.mxu0 %v1145_v5  ;;  %1179 = vmatpush3.bf16.msra.mxu1 %v1656_v10  ;;  %v1153_v18 = vpack.c.bf16 %v284_v16, %v283_v14  ;;  %v398_v20 = vld [vmem:[#allocation8 + $0x28] sm:$0xff]  ;;  %v286_v22 = vld [vmem:[#allocation5 + $0x38] sm:$0xff]  ;;  %v399_v25 = vld [vmem:[#allocation8 + $0x30] sm:$0xff]  ;;  %p1406_p11 = scmp.ne.s32.totalorder %s1764_s7, %s1405_s25  ;;  %s1485_s22 = smov [#allocation10]  }
  0x5e   : > { %1150 = vmatprep.subr.bf16.mxu0 %v1149_v11  ;;  %1180 = vmatprep.subr.bf16.mxu1 %v1482_v6  ;;  %v1665_v23 = vpack.c.bf16 %v398_v20, %v397_v19  ;;  %v1157_v24 = vpack.c.bf16 %v286_v22, %v285_v21  ;;  %v400_v26 = vld [vmem:[#allocation8 + $0x38] sm:$0xff]  ;;  %v287_v27 = vld [vmem:[#allocation5 + $0x40] sm:$0xff]  ;;  %v288_v28 = vld [vmem:[#allocation5 + $0x48] sm:$0xff]  ;;  %s1409_s26 = sshll.u32 %s1485_s22, 4  ;;  %s1410_s26 = int_to_ptr.vmem [resolvable:$false] %s1409_s26 }
  0x5f   : > { %v266_v29 = vld [vmem:[%s1646_s11] sm:$0xff]  ;;  %v267_v30 = vld [vmem:[%s1646_s11 + $0x8] sm:$0xff]  ;;  %v1672_v31 = vpack.c.bf16 %v400_v26, %v399_v25  ;;  %v1161_v32 = vpack.c.bf16 %v288_v28, %v287_v27  ;;  %v402_v34 = vld [vmem:[#allocation8 + $0x48] sm:$0xff]  ;;  %p1407_p3 = pnand %p1406_p11, %p1829_p2  ;;  %s1411_s9 = scalar_lea.vmem %s1410_s26, 1024 }
  0x60   : > { %271 = vst.msk [vmem:[#allocation4] sm:$0xff] %vm270_vm1, %v266_v29  ;;  %272 = vst.msk [vmem:[#allocation4 + $0x8] sm:$0xff] %vm270_vm1, %v267_v30  ;;  %v401_v33 = vld [vmem:[#allocation8 + $0x40] sm:$0xff]  ;;  %v289_v35 = vld [vmem:[#allocation5 + $0x50] sm:$0xff]  ;;  %p1412_p7 = scmp.lt.s32.totalorder %s1764_s7, %s1410_s26  ;;  %p1413_p8 = scmp.lt.s32.totalorder %s1411_s9, %s1405_s25 }
  0x61   : > { %1152 = vmatpush3.bf16.msra.mxu0 %v1149_v11  ;;  %1182 = vmatpush3.bf16.msra.mxu1 %v1661_v17  ;;  %v290_v36 = vld [vmem:[#allocation5 + $0x58] sm:$0xff]  ;;  %v1677_v37 = vpack.c.bf16 %v402_v34, %v401_v33  ;;  %v403_v39 = vld [vmem:[#allocation8 + $0x50] sm:$0xff]  ;;  %v291_v41 = vld [vmem:[#allocation5 + $0x60] sm:$0xff]  ;;  %p1408_p4 = pneg %p1407_p3 }
  0x62   : > { %1154 = vmatprep.subr.bf16.mxu0 %v1153_v18  ;;  %1183 = vmatprep.subr.bf16.mxu1 %v1482_v6  ;;  %v1165_v38 = vpack.c.bf16 %v290_v36, %v289_v35  ;;  %v404_v40 = vld [vmem:[#allocation8 + $0x58] sm:$0xff]  ;;  %v292_v42 = vld [vmem:[#allocation5 + $0x68] sm:$0xff]  ;;  %v405_v46 = vld [vmem:[#allocation8 + $0x60] sm:$0xff]  ;;  %p1414_p12 = por %p1413_p8, %p1412_p7 }
  0x63   : > { %v1681_v44 = vpack.c.bf16 %v404_v40, %v403_v39  ;;  %v1169_v45 = vpack.c.bf16 %v292_v42, %v291_v41  ;;  %v406_v47 = vld [vmem:[#allocation8 + $0x68] sm:$0xff]  ;;  %v293_v48 = vld [vmem:[#allocation5 + $0x70] sm:$0xff]  ;;  %v294_v49 = vld [vmem:[#allocation5 + $0x78] sm:$0xff] }
  0x64   : > { %v1685_v50 = vpack.c.bf16 %v406_v47, %v405_v46  ;;  %v1173_v51 = vpack.c.bf16 %v294_v49, %v293_v48  ;;  %v407_v52 = vld [vmem:[#allocation8 + $0x70] sm:$0xff]  ;;  %v408_v53 = vld [vmem:[#allocation8 + $0x78] sm:$0xff]  ;;  %v268_v57 = vld [vmem:[%s1646_s11 + $0x10] sm:$0xff]  ;;  %p1415_p0 = pnand %p1414_p12, %p1408_p4 }
  0x65   : > { %1156 = vmatpush3.bf16.msra.mxu0 %v1153_v18  ;;  %1185 = vmatpush3.bf16.msra.mxu1 %v1665_v23  ;;  %v1689_v54 = vpack.c.bf16 %v408_v53, %v407_v52  ;;  %v391_v56 = vld [vmem:[#allocation2] sm:$0xff]  ;;  %273 = vst.msk [vmem:[#allocation4 + $0x10] sm:$0xff] %vm270_vm1, %v268_v57  ;;  %v269_v58 = vld [vmem:[%s1646_s11 + $0x18] sm:$0xff] }
  0x66   : > { %1158 = vmatprep.subr.bf16.mxu0 %v1157_v24  ;;  %1186 = vmatprep.subr.bf16.mxu1 %v1482_v6  ;;  %274 = vst.msk [vmem:[#allocation4 + $0x18] sm:$0xff] %vm270_vm1, %v269_v58  ;;  %v869_v61 = vld [vmem:[%s1814_s4] ss:$0 sm:$0xff] }
  0x67   : > { %v275_v43 = vld [vmem:[#allocation4] sm:$0xff]  ;;  %v276_v55 = vld [vmem:[#allocation4 + $0x8] sm:$0xff] }
  0x68   : > { %999 = vmatprep.mubr.f32.mxu0 %v275_v43 }
  0x69   : > { %1160 = vmatpush3.bf16.msra.mxu0 %v1157_v24  ;;  %1188 = vmatpush3.bf16.msra.mxu1 %v1672_v31 }
  0x6a   : > { %1162 = vmatprep.subr.bf16.mxu0 %v1161_v32  ;;  %1189 = vmatprep.subr.bf16.mxu1 %v1482_v6 }
  0x6c   : > { %v277_v59 = vld [vmem:[#allocation4 + $0x10] sm:$0xff] }
  0x6d   : > { %1164 = vmatpush3.bf16.msra.mxu0 %v1161_v32  ;;  %1191 = vmatpush3.bf16.msra.mxu1 %v1677_v37  ;;  %v278_v60 = vld [vmem:[#allocation4 + $0x18] sm:$0xff] }
  0x6e   : > { %1166 = vmatprep.subr.bf16.mxu0 %v1165_v38  ;;  %1192 = vmatprep.subr.bf16.mxu1 %v1482_v6 }
  0x71   : > { %1168 = vmatpush3.bf16.msra.mxu0 %v1165_v38  ;;  %1194 = vmatpush3.bf16.msra.mxu1 %v1681_v44 }
  0x72   : > { %1170 = vmatprep.subr.bf16.mxu0 %v1169_v45  ;;  %1195 = vmatprep.subr.bf16.mxu1 %v1482_v6 }
  0x75   : > { %1172 = vmatpush3.bf16.msra.mxu0 %v1169_v45  ;;  %1197 = vmatpush3.bf16.msra.mxu1 %v1685_v50 }
  0x76   : > { %1174 = vmatprep.subr.bf16.mxu0 %v1173_v51  ;;  %1198 = vmatprep.subr.bf16.mxu1 %v1482_v6 }
  0x79   : > { %1176 = vmatpush3.bf16.msra.mxu0 %v1173_v51  ;;  %1200 = vmatpush3.bf16.msra.mxu1 %v1689_v54 }
  0x7a   : > { %1201 = vmatprep.subr.bf16.mxu0 %v1482_v6  ;;  %1225 = vmatprep.subr.bf16.mxu1 %v1482_v6 }
  0x7c   : > { %1000 = vmatmul.mubr.f32.vlgmr.msra.gmra.mrb[0].mxu0 %v276_v55  ;;  %1038 = vmatmul.mubr.f32.vlgmr.msra.gmra.mrb[0].mxu1 %v391_v56 }
  0x7d   : > { %1203 = vmatpush3.bf16.msra.mxu0 %v1656_v10  ;;  %1227 = vmatpush3.bf16.msra.mxu1 %v1656_v10 }
  0x7e   : > { %1204 = vmatprep.subr.bf16.mxu0 %v1482_v6  ;;  %1228 = vmatprep.subr.bf16.mxu1 %v1482_v6 }
  0x7f   : > { %1107 = vmatprep.mubr.msk.f32.mxu1 %vm1483_vm0, %v1484_v15  ;;  %1002 = vmatprep.mubr.f32.mxu0 %v277_v59 }
  0x80   : > { %1003 = vmatmul.mubr.f32.gmra.mrb[2].mxu0 %v278_v60 }
  0x81   : > { %1206 = vmatpush3.bf16.msra.mxu0 %v1661_v17  ;;  %1230 = vmatpush3.bf16.msra.mxu1 %v1661_v17 }
  0x82   : > { %1207 = vmatprep.subr.bf16.mxu0 %v1482_v6  ;;  %1231 = vmatprep.subr.bf16.mxu1 %v1482_v6 }
  0x83   : > { %1072 = vmatprep.mubr.msk.f32.mxu0 %vm1483_vm0, %v1484_v15 }
  0x85   : > { %1209 = vmatpush3.bf16.msra.mxu0 %v1665_v23  ;;  %1233 = vmatpush3.bf16.msra.mxu1 %v1665_v23 }
  0x86   : > { %1210 = vmatprep.subr.bf16.mxu0 %v1482_v6  ;;  %1234 = vmatprep.subr.bf16.mxu1 %v1482_v6 }
  0x89   : > { %1212 = vmatpush3.bf16.msra.mxu0 %v1672_v31  ;;  %1236 = vmatpush3.bf16.msra.mxu1 %v1672_v31 }
  0x8a   : > { %1213 = vmatprep.subr.bf16.mxu0 %v1482_v6  ;;  %1237 = vmatprep.subr.bf16.mxu1 %v1482_v6 }
  0x8d   : > { %1215 = vmatpush3.bf16.msra.mxu0 %v1677_v37  ;;  %1239 = vmatpush3.bf16.msra.mxu1 %v1677_v37 }
  0x8e   : > { %1216 = vmatprep.subr.bf16.mxu0 %v1482_v6  ;;  %1240 = vmatprep.subr.bf16.mxu1 %v1482_v6 }
  0x91   : > { %1218 = vmatpush3.bf16.msra.mxu0 %v1681_v44  ;;  %1242 = vmatpush3.bf16.msra.mxu1 %v1681_v44 }
  0x92   : > { %1219 = vmatprep.subr.bf16.mxu0 %v1482_v6  ;;  %1243 = vmatprep.subr.bf16.mxu1 %v1482_v6 }
  0x95   : > { %1221 = vmatpush3.bf16.msra.mxu0 %v1685_v50  ;;  %1245 = vmatpush3.bf16.msra.mxu1 %v1685_v50 }
  0x96   : > { %1222 = vmatprep.subr.bf16.mxu0 %v1482_v6  ;;  %1246 = vmatprep.subr.bf16.mxu1 %v1482_v6 }
  0x99   : > { %1224 = vmatpush3.bf16.msra.mxu0 %v1689_v54  ;;  %1248 = vmatpush3.bf16.msra.mxu1 %v1689_v54 }
  0x9a   : > { %1249 = vmatprep.subr.bf16.mxu0 %v1482_v6 }
 0x14f   : > { %v1001_v62 = vpop.f32.mrb[0].mxu0  ;;  %v475_v63 = vpop.f32.mrb[0].mxu1 }
 0x150   : > { %v368_v0 = vpop.f32.mrb[1].mxu0  ;;  %v1039_v1 = vpop.f32.mrb[1].mxu1  ;;  %v374_v8 = vadd.f32 %v1001_v62, %v869_v61 }
 0x151   : > { %v369_v2 = vadd.f32 %v869_v61, %v368_v0 }
 0x153   : > { %v479_v3 = vadd.f32 %v475_v63, %v369_v2  ;;  %v1004_v5 = vpop.f32.mrb[2].mxu0 }
 0x154   : > { %v378_v7 = vpop.f32.mrb[3].mxu0 }
 0x155   : > { %1341 = vtanh.f32 %v479_v3  ;;  %v379_v13 = vadd.f32 %v869_v61, %v378_v7 }
 0x15f   : > { %v1342_v4 = vpop.eup %1341 }
 0x160   : > { %481 = vst [vmem:[%s1648_s12] sm:$0xff] %v1342_v4  ;;  %1073 = vmatmul.mubr.f32.vlgmr.msra.gmra.mrb[4].mxu0 %v1342_v4 }
 0x161   : > { %1251 = vmatpush3.bf16.msra.mxu0 %v1656_v10  ;;  %1142 = vmatprep.mubr.msk.f32.mxu0 %vm1483_vm0, %v1484_v15 }
 0x162   : > { %1252 = vmatprep.subr.bf16.mxu0 %v1482_v6 }
 0x165   : > { %1254 = vmatpush3.bf16.msra.mxu0 %v1661_v17  ;;  %v384_v17 = vadd.f32 %v1004_v5, %v869_v61 }
 0x166   : > { %1255 = vmatprep.subr.bf16.mxu0 %v1482_v6 }
 0x169   : > { %1257 = vmatpush3.bf16.msra.mxu0 %v1665_v23 }
 0x16a   : > { %1258 = vmatprep.subr.bf16.mxu0 %v1482_v6 }
 0x16d   : > { %1260 = vmatpush3.bf16.msra.mxu0 %v1672_v31 }
 0x16e   : > { %1261 = vmatprep.subr.bf16.mxu0 %v1482_v6 }
 0x171   : > { %1263 = vmatpush3.bf16.msra.mxu0 %v1677_v37 }
 0x172   : > { %1264 = vmatprep.subr.bf16.mxu0 %v1482_v6 }
 0x175   : > { %1266 = vmatpush3.bf16.msra.mxu0 %v1681_v44 }
 0x176   : > { %1267 = vmatprep.subr.bf16.mxu0 %v1482_v6 }
 0x179   : > { %1269 = vmatpush3.bf16.msra.mxu0 %v1685_v50 }
 0x17a   : > { %1270 = vmatprep.subr.bf16.mxu0 %v1482_v6 }
 0x17d   : > { %1272 = vmatpush3.bf16.msra.mxu0 %v1689_v54 }
 0x233   : > { %v566_v9 = vpop.f32.mrb[4].mxu0 }
 0x234   : > { %v570_v10 = vadd.f32 %v566_v9, %v374_v8  ;;  %v1074_v11 = vpop.f32.mrb[5].mxu0 }
 0x236   : > { %1343 = vtanh.f32 %v570_v10 }
 0x240   : > { %v1344_v12 = vpop.eup %1343 }
 0x241   : > { %870 = vst [vmem:[%s1648_s12 + $0x8] sm:$0xff] %v1344_v12  ;;  %1108 = vmatmul.mubr.f32.vlgmr.msra.gmra.mrb[2].mxu1 %v1344_v12 }
 0x314   : > { %v658_v14 = vpop.f32.mrb[2].mxu1 }
 0x315   : > { %v662_v15 = vadd.f32 %v658_v14, %v379_v13  ;;  %v1109_v6 = vpop.f32.mrb[3].mxu1 }
 0x317   : > { %1345 = vtanh.f32 %v662_v15 }
 0x321   : > { %v1346_v16 = vpop.eup %1345 }
 0x322   : > { %871 = vst [vmem:[%s1648_s12 + $0x10] sm:$0xff] %v1346_v16  ;;  %1143 = vmatmul.mubr.f32.vlgmr.msra.gmra.mrb[6].mxu0 %v1346_v16 }
 0x3f5   : > { %v750_v18 = vpop.f32.mrb[6].mxu0 }
 0x3f6   : > { %v754_v19 = vadd.f32 %v750_v18, %v384_v17  ;;  %v1144_v20 = vpop.f32.mrb[7].mxu0 }
 0x3f8   : > { %1347 = vtanh.f32 %v754_v19 }
 0x402   : > { %v1348_v21 = vpop.eup %1347 }
 0x403   : > { %872 = vst [vmem:[%s1648_s12 + $0x18] sm:$0xff] %v1348_v21  ;;  %758 = vst [vmem:[#allocation2] sm:$0xff] %v1348_v21 }
 0x404   : > { %1418 = shalt.err (!%p1415_p0)
}
 0x405   : > { %s1419_s8 = scalar_lea.hbm %s1762_s10, 512  ;;  %s1423_s13 = scalar_lea.hbm %s1815_s5, 1024 }
 0x406   : > { %p1420_p5 = scmp.ne.s32.totalorder %s1762_s10, %s1419_s8  ;;  %p1424_p9 = scmp.lt.u32.totalorder %s1762_s10, %s1815_s5 }
 0x407   : > { %p1425_p13 = scmp.lt.u32.totalorder %s1423_s13, %s1419_s8  ;;  %p1427_p11 = scmp.lt.u32.totalorder %s1419_s8, %s1762_s10 }
 0x408   : > { %p1421_p1 = pnand %p1420_p5, %p1829_p2 }
 0x409   : > { %p1426_p10 = por %p1425_p13, %p1424_p9 }
 0x40a   : > { %p1422_p6 = pneg %p1421_p1 }
 0x40b   : > { %p1428_p3 = por %p1427_p11, %p1426_p10 }
 0x40d   : > { %p1429_p4 = pnand %p1428_p3, %p1422_p6 }
 0x40f   : > { %1432 = shalt.err (!%p1429_p4)
}
 0x410   : > { %s1486_s16 = smov 128   ;;  %s1487_s17 = smov 8  }
 0x411   : > { %1281 = dma.vmem_to_hbm [thread:$0]  (%p1829_p2), %s1764_s7, 512, %s1762_s10, %s1769_s30, %s1486_s16, %s1486_s16, %s1487_s17  }
 0x412 PF: > { %p1298_p7 = scmp.ge.s32.totalorder %s1475_s21, 2  ;;  %s788_s23 = sand.u32 1, %s1463_s18  }
 0x413   : > { %p1830_p8 = scmp.ne.s32.totalorder %s1820_s29, 0  ;;  %s789_s6 = scalar_lea.sflag [#allocation7], %s788_s23 }
 0x415   : > { %p1291_p12 = pnand %p1298_p7, %p1830_p8 }
 0x417   : > { %1458 = dma.done.wait (!%p1291_p12), %s789_s6, 512  }
 0x418   : > { %1460 = vsyncadd (!%p1291_p12), %s789_s6, 4294966784  ;;  %p17_p0 = scmp.ge.s32.totalorder %s1543_s24, 4   ;;  %s1831_s18 = smov %s1467_s19 }
 0x419   : > { %s1832_s19 = smov %s1471_s20  ;;  %s1833_s20 = smov %s1554_s27 }
 0x41a   : > { %s1834_s21 = smov %s1543_s24  ;;  %19 = sbr.rel (!%p17_p0) target bundleno = 5 (0x5), region = 94 }
 0x421   :  { %794 = vsyncpa [#allocation6], 1 }
 0x422   :  { %796 = vsyncpa [#allocation6 + $0x1], 1 }
 0x423   :  { %797 = vsyncpa [#allocation9], 1 }
 0x424   :  { %798 = vsyncpa [#allocation7], 1 }
 0x425   :  { %800 = vsyncpa [#allocation7 + $0x1], 1 }

</bundles_post_ra>
